<compile_context>
chip_gen: v7x
topology: tpu7x:2x2x1
jax: 0.10.0
libtpu: 0.0.40
codegen_flags: <defaults>
</compile_context>

<pallas_src>
import jax
import jax.numpy as jnp
from jax.experimental import pallas as pl
from jax.experimental.pallas import tpu as pltpu


# ---------------------------------------------------------------------------
# Fused kernel: global average pool + N x (Linear + folded-BN + ReLU).
# Every operand is a single full-array VMEM block (weights resident); the
# activation stays on-chip between layers.
# ---------------------------------------------------------------------------
def fused_attmlp_kernel(x_ref, *refs):
    o_ref = refs[-1]
    wb_refs = refs[:-1]
    n_layers = len(wb_refs) // 2

    # AdaptiveAvgPool2d((1,1)) + view(B, -1): mean over the spatial (lane) axis.
    h = jnp.mean(x_ref[...], axis=-1).astype(jnp.bfloat16)      # (B, C)

    for li in range(n_layers):
        w_ref = wb_refs[2 * li]        # (K, N) bf16, BN scale folded in
        b_ref = wb_refs[2 * li + 1]    # (1, N) f32, BN shift folded in
        y = jnp.dot(h, w_ref[...], preferred_element_type=jnp.float32)
        y = jnp.maximum(y + b_ref[...], 0.0)                    # bias+BN+ReLU
        h = y if li == n_layers - 1 else y.astype(jnp.bfloat16)

    o_ref[...] = h.astype(o_ref.dtype)


def att_mlp_forward(images, params, eps=1e-5):
    """images: (B, C, H, W) f32 feature map (stand-in for the resnet output).
    params: list of (w, b, gamma, beta, running_mean, running_var) per layer."""
    B, C, H, W = images.shape
    HW = H * W

    # NCHW -> (B, C, HW): pure reshape, no transpose / pad / cast round trip.
    x = images.reshape(B, C, HW)

    inputs = [x]
    in_specs = [pl.BlockSpec((B, C, HW), lambda i: (0, 0, 0))]
    flops = B * C * HW  # pooling adds
    for (w, b, gamma, beta, mean, var) in params:
        fan_out, fan_in = w.shape
        # Fold inference BatchNorm1d into the Linear layer:
        #   gamma*(x@W.T + b - mean)/sqrt(var+eps) + beta  ==  x @ W' + b'
        scale = gamma / jnp.sqrt(var + eps)
        shift = beta - mean * scale
        w_f = (w.T * scale[None, :]).astype(jnp.bfloat16)         # (in, out)
        b_f = ((b * scale + shift).astype(jnp.float32))[None, :]  # (1, out)
        inputs += [w_f, b_f]
        in_specs += [pl.BlockSpec((fan_in, fan_out), lambda i: (0, 0)),
                     pl.BlockSpec((1, fan_out), lambda i: (0, 0))]
        flops += 2 * B * fan_in * fan_out

    vocab = params[-1][0].shape[0]
    out_shape = jax.ShapeDtypeStruct((B, vocab), jnp.float32)
    out_specs = pl.BlockSpec((B, vocab), lambda i: (0, 0))

    in_bytes = sum(int(a.size) * a.dtype.itemsize for a in inputs)
    out_bytes = B * vocab * 4
    cost = pl.CostEstimate(flops=int(flops), transcendentals=0,
                           bytes_accessed=int(in_bytes + out_bytes))
    # Resident footprint (x + weights/biases + out) with headroom for the
    # pipeline's buffering; capped under v7x's 64 MiB physical VMEM and above
    # v5e's 16 MiB default scoped limit.
    vmem_limit = int(min(48 * 1024 * 1024,
                         max(32 * 1024 * 1024, 3 * (in_bytes + out_bytes))))

    return pl.pallas_call(
        fused_attmlp_kernel,
        grid=(1,),
        in_specs=in_specs,
        out_specs=out_specs,
        out_shape=out_shape,
        compiler_params=pltpu.CompilerParams(
            dimension_semantics=("arbitrary",),
            vmem_limit_bytes=vmem_limit),
        cost_estimate=cost,
    )(*inputs)


# ---------------------------------------------------------------------------
# Pure-JAX f32 reference (same semantics) for correctness check.
# ---------------------------------------------------------------------------
def ref_forward(images, params, eps=1e-5):
    B = images.shape[0]
    h = images.reshape(B, images.shape[1], -1).mean(-1)
    for (w, b, gamma, beta, mean, var) in params:
        y = h @ w.T + b
        y = gamma * (y - mean) / jnp.sqrt(var + eps) + beta
        h = jnp.maximum(y, 0.0)
    return h


def init_params(key, resnet_out_size, hidden_size, vocab_size):
    """Deterministic init mimicking PyTorch defaults (Linear U(+-1/sqrt(fan_in)),
    BN gamma=1, beta=0, running_mean=0, running_var=1)."""
    dims = [(resnet_out_size, hidden_size),
            (hidden_size, hidden_size),
            (hidden_size, hidden_size),
            (hidden_size, vocab_size)]
    params = []
    for (fan_in, fan_out) in dims:
        key, kw, kb = jax.random.split(key, 3)
        bound = 1.0 / jnp.sqrt(fan_in)
        w = jax.random.uniform(kw, (fan_out, fan_in), jnp.float32, -bound, bound)
        b = jax.random.uniform(kb, (fan_out,), jnp.float32, -bound, bound)
        gamma = jnp.ones((fan_out,), jnp.float32)
        beta = jnp.zeros((fan_out,), jnp.float32)
        running_mean = jnp.zeros((fan_out,), jnp.float32)
        running_var = jnp.ones((fan_out,), jnp.float32)
        params.append((w, b, gamma, beta, running_mean, running_var))
    return params


if __name__ == "__main__":
    # Small deterministic shapes chosen to exercise odd (non-128) dims
    # (real model: resnet_out_size=2048, HW=49, hidden/vocab per config).
    B, resnet_out_size, H, W = 6, 160, 7, 7
    hidden_size, vocab_size = 96, 20

    key = jax.random.PRNGKey(0)
    key, kimg = jax.random.split(key)
    # Stand-in for the (omitted) resnet152 body's output activation map.
    images = jax.random.normal(kimg, (B, resnet_out_size, H, W), jnp.float32)
    params = init_params(key, resnet_out_size, hidden_size, vocab_size)

    out = jax.block_until_ready(att_mlp_forward(images, params))
    ref = ref_forward(images, params)

    assert out.shape == (B, vocab_size), out.shape
    # bf16 weights/activations -> looser tolerance than the f32 reference.
    assert jnp.allclose(out, ref, atol=3e-2, rtol=3e-2), \
        f"max abs diff {float(jnp.max(jnp.abs(out - ref)))}"

    print("KERNEL_OK")
</pallas_src>

<mosaic_0001>
module attributes {stable_mosaic.version = 11 : i64} {
  func.func @fused_attmlp_kernel(%arg0: i32, %arg1: memref<6x160x49xf32, #tpu.memory_space<vmem>>, %arg2: memref<160x96xbf16, #tpu.memory_space<vmem>>, %arg3: memref<1x96xf32, #tpu.memory_space<vmem>>, %arg4: memref<96x96xbf16, #tpu.memory_space<vmem>>, %arg5: memref<1x96xf32, #tpu.memory_space<vmem>>, %arg6: memref<96x96xbf16, #tpu.memory_space<vmem>>, %arg7: memref<1x96xf32, #tpu.memory_space<vmem>>, %arg8: memref<96x20xbf16, #tpu.memory_space<vmem>>, %arg9: memref<1x20xf32, #tpu.memory_space<vmem>>, %arg10: memref<6x20xf32, #tpu.memory_space<vmem>>) attributes {dimension_semantics = [#tpu.dimension_semantics<arbitrary>], iteration_bounds = array<i64: 1>, scalar_prefetch = 0 : i64, scratch_operands = 0 : i64, tpu.core_type = #tpu.core_type<tc>, window_params = [{pipeline_mode = #tpu.pipeline_mode<synchronous>, transform_indices = @transform_0, window_bounds = array<i64: 6, 160, 49>}, {pipeline_mode = #tpu.pipeline_mode<synchronous>, transform_indices = @transform_1, window_bounds = array<i64: 160, 96>}, {pipeline_mode = #tpu.pipeline_mode<synchronous>, transform_indices = @transform_2, window_bounds = array<i64: 1, 96>}, {pipeline_mode = #tpu.pipeline_mode<synchronous>, transform_indices = @transform_3, window_bounds = array<i64: 96, 96>}, {pipeline_mode = #tpu.pipeline_mode<synchronous>, transform_indices = @transform_4, window_bounds = array<i64: 1, 96>}, {pipeline_mode = #tpu.pipeline_mode<synchronous>, transform_indices = @transform_5, window_bounds = array<i64: 96, 96>}, {pipeline_mode = #tpu.pipeline_mode<synchronous>, transform_indices = @transform_6, window_bounds = array<i64: 1, 96>}, {pipeline_mode = #tpu.pipeline_mode<synchronous>, transform_indices = @transform_7, window_bounds = array<i64: 96, 20>}, {pipeline_mode = #tpu.pipeline_mode<synchronous>, transform_indices = @transform_8, window_bounds = array<i64: 1, 20>}, {pipeline_mode = #tpu.pipeline_mode<synchronous>, transform_indices = @transform_9, window_bounds = array<i64: 6, 20>}]} {
    %c0 = arith.constant 0 : index
    %c0_0 = arith.constant 0 : index
    %c0_1 = arith.constant 0 : index
    %0 = vector.load %arg1[%c0, %c0_0, %c0_1] : memref<6x160x49xf32, #tpu.memory_space<vmem>>, vector<6x160x49xf32>
    %cst = arith.constant dense<0.000000e+00> : vector<6x160xf32>
    %1 = vector.multi_reduction <add>, %0, %cst [2] : vector<6x160x49xf32> to vector<6x160xf32>
    %cst_2 = arith.constant 4.900000e+01 : f32
    %2 = vector.broadcast %cst_2 : f32 to vector<6x160xf32>
    %3 = arith.divf %1, %2 : vector<6x160xf32>
    %4 = arith.truncf %3 : vector<6x160xf32> to vector<6x160xbf16>
    %c0_3 = arith.constant 0 : index
    %c0_4 = arith.constant 0 : index
    %5 = vector.load %arg2[%c0_3, %c0_4] : memref<160x96xbf16, #tpu.memory_space<vmem>>, vector<160x96xbf16>
    %cst_5 = arith.constant dense<0.000000e+00> : vector<6x96xf32>
    %6 = tpu.matmul %4, %5, %cst_5 {dimension_numbers = #tpu.dot_dimension_numbers<[1], [0], [0], [1], [0, 0, 1, 1], [], []>} : vector<6x160xbf16>, vector<160x96xbf16>, vector<6x96xf32> -> vector<6x96xf32>
    %c0_6 = arith.constant 0 : index
    %c0_7 = arith.constant 0 : index
    %7 = vector.load %arg3[%c0_6, %c0_7] : memref<1x96xf32, #tpu.memory_space<vmem>>, vector<1x96xf32>
    %8 = vector.broadcast %7 : vector<1x96xf32> to vector<6x96xf32>
    %9 = arith.addf %6, %8 : vector<6x96xf32>
    %cst_8 = arith.constant 0.000000e+00 : f32
    %10 = vector.broadcast %cst_8 : f32 to vector<6x96xf32>
    %11 = arith.maximumf %9, %10 : vector<6x96xf32>
    %12 = arith.truncf %11 : vector<6x96xf32> to vector<6x96xbf16>
    %c0_9 = arith.constant 0 : index
    %c0_10 = arith.constant 0 : index
    %13 = vector.load %arg4[%c0_9, %c0_10] : memref<96x96xbf16, #tpu.memory_space<vmem>>, vector<96x96xbf16>
    %cst_11 = arith.constant dense<0.000000e+00> : vector<6x96xf32>
    %14 = tpu.matmul %12, %13, %cst_11 {dimension_numbers = #tpu.dot_dimension_numbers<[1], [0], [0], [1], [0, 0, 1, 1], [], []>} : vector<6x96xbf16>, vector<96x96xbf16>, vector<6x96xf32> -> vector<6x96xf32>
    %c0_12 = arith.constant 0 : index
    %c0_13 = arith.constant 0 : index
    %15 = vector.load %arg5[%c0_12, %c0_13] : memref<1x96xf32, #tpu.memory_space<vmem>>, vector<1x96xf32>
    %16 = vector.broadcast %15 : vector<1x96xf32> to vector<6x96xf32>
    %17 = arith.addf %14, %16 : vector<6x96xf32>
    %cst_14 = arith.constant 0.000000e+00 : f32
    %18 = vector.broadcast %cst_14 : f32 to vector<6x96xf32>
    %19 = arith.maximumf %17, %18 : vector<6x96xf32>
    %20 = arith.truncf %19 : vector<6x96xf32> to vector<6x96xbf16>
    %c0_15 = arith.constant 0 : index
    %c0_16 = arith.constant 0 : index
    %21 = vector.load %arg6[%c0_15, %c0_16] : memref<96x96xbf16, #tpu.memory_space<vmem>>, vector<96x96xbf16>
    %cst_17 = arith.constant dense<0.000000e+00> : vector<6x96xf32>
    %22 = tpu.matmul %20, %21, %cst_17 {dimension_numbers = #tpu.dot_dimension_numbers<[1], [0], [0], [1], [0, 0, 1, 1], [], []>} : vector<6x96xbf16>, vector<96x96xbf16>, vector<6x96xf32> -> vector<6x96xf32>
    %c0_18 = arith.constant 0 : index
    %c0_19 = arith.constant 0 : index
    %23 = vector.load %arg7[%c0_18, %c0_19] : memref<1x96xf32, #tpu.memory_space<vmem>>, vector<1x96xf32>
    %24 = vector.broadcast %23 : vector<1x96xf32> to vector<6x96xf32>
    %25 = arith.addf %22, %24 : vector<6x96xf32>
    %cst_20 = arith.constant 0.000000e+00 : f32
    %26 = vector.broadcast %cst_20 : f32 to vector<6x96xf32>
    %27 = arith.maximumf %25, %26 : vector<6x96xf32>
    %28 = arith.truncf %27 : vector<6x96xf32> to vector<6x96xbf16>
    %c0_21 = arith.constant 0 : index
    %c0_22 = arith.constant 0 : index
    %29 = vector.load %arg8[%c0_21, %c0_22] : memref<96x20xbf16, #tpu.memory_space<vmem>>, vector<96x20xbf16>
    %cst_23 = arith.constant dense<0.000000e+00> : vector<6x20xf32>
    %30 = tpu.matmul %28, %29, %cst_23 {dimension_numbers = #tpu.dot_dimension_numbers<[1], [0], [0], [1], [0, 0, 1, 1], [], []>} : vector<6x96xbf16>, vector<96x20xbf16>, vector<6x20xf32> -> vector<6x20xf32>
    %c0_24 = arith.constant 0 : index
    %c0_25 = arith.constant 0 : index
    %31 = vector.load %arg9[%c0_24, %c0_25] : memref<1x20xf32, #tpu.memory_space<vmem>>, vector<1x20xf32>
    %32 = vector.broadcast %31 : vector<1x20xf32> to vector<6x20xf32>
    %33 = arith.addf %30, %32 : vector<6x20xf32>
    %cst_26 = arith.constant 0.000000e+00 : f32
    %34 = vector.broadcast %cst_26 : f32 to vector<6x20xf32>
    %35 = arith.maximumf %33, %34 : vector<6x20xf32>
    %c0_27 = arith.constant 0 : index
    %c0_28 = arith.constant 0 : index
    %36 = vector.load %arg10[%c0_27, %c0_28] : memref<6x20xf32, #tpu.memory_space<vmem>>, vector<6x20xf32>
    tpu.vector_store %arg10[%c0_27, %c0_28], %35 {strides = array<i32>} : memref<6x20xf32, #tpu.memory_space<vmem>>, vector<6x20xf32>,
    return
  }
  func.func @transform_0(%arg0: i32) -> (i32, i32, i32) {
    %c0_i32 = arith.constant 0 : i32
    %c0_i32_0 = arith.constant 0 : i32
    %c0_i32_1 = arith.constant 0 : i32
    %c0_i32_2 = arith.constant 0 : i32
    return %c0_i32, %c0_i32_0, %c0_i32_1 : i32, i32, i32
  }
  func.func @transform_1(%arg0: i32) -> (i32, i32) {
    %c0_i32 = arith.constant 0 : i32
    %c0_i32_0 = arith.constant 0 : i32
    %c0_i32_1 = arith.constant 0 : i32
    return %c0_i32, %c0_i32_0 : i32, i32
  }
  func.func @transform_2(%arg0: i32) -> (i32, i32) {
    %c0_i32 = arith.constant 0 : i32
    %c0_i32_0 = arith.constant 0 : i32
    %c0_i32_1 = arith.constant 0 : i32
    return %c0_i32, %c0_i32_0 : i32, i32
  }
  func.func @transform_3(%arg0: i32) -> (i32, i32) {
    %c0_i32 = arith.constant 0 : i32
    %c0_i32_0 = arith.constant 0 : i32
    %c0_i32_1 = arith.constant 0 : i32
    return %c0_i32, %c0_i32_0 : i32, i32
  }
  func.func @transform_4(%arg0: i32) -> (i32, i32) {
    %c0_i32 = arith.constant 0 : i32
    %c0_i32_0 = arith.constant 0 : i32
    %c0_i32_1 = arith.constant 0 : i32
    return %c0_i32, %c0_i32_0 : i32, i32
  }
  func.func @transform_5(%arg0: i32) -> (i32, i32) {
    %c0_i32 = arith.constant 0 : i32
    %c0_i32_0 = arith.constant 0 : i32
    %c0_i32_1 = arith.constant 0 : i32
    return %c0_i32, %c0_i32_0 : i32, i32
  }
  func.func @transform_6(%arg0: i32) -> (i32, i32) {
    %c0_i32 = arith.constant 0 : i32
    %c0_i32_0 = arith.constant 0 : i32
    %c0_i32_1 = arith.constant 0 : i32
    return %c0_i32, %c0_i32_0 : i32, i32
  }
  func.func @transform_7(%arg0: i32) -> (i32, i32) {
    %c0_i32 = arith.constant 0 : i32
    %c0_i32_0 = arith.constant 0 : i32
    %c0_i32_1 = arith.constant 0 : i32
    return %c0_i32, %c0_i32_0 : i32, i32
  }
  func.func @transform_8(%arg0: i32) -> (i32, i32) {
    %c0_i32 = arith.constant 0 : i32
    %c0_i32_0 = arith.constant 0 : i32
    %c0_i32_1 = arith.constant 0 : i32
    return %c0_i32, %c0_i32_0 : i32, i32
  }
  func.func @transform_9(%arg0: i32) -> (i32, i32) {
    %c0_i32 = arith.constant 0 : i32
    %c0_i32_0 = arith.constant 0 : i32
    %c0_i32_1 = arith.constant 0 : i32
    return %c0_i32, %c0_i32_0 : i32, i32
  }
}

</mosaic_0001>

<bundles_post_ra>
// kernel: tpu_custom_call.1
= control target key start
LH: loop header
LB: loop body
LE: loop exit
PB: predicated region body
PF: predicated region fallthrough
CT: control target
= control target key end

     0   :  { %vm154_vm0 = vcmask 400384   ;;  %s3218_s0 = inlined_call_operand.vmem [shape: f32[6,160,49], index: 0, kind: input, shape index: {}]   ;;  %s3219_s1 = inlined_call_operand.vmem [shape: bf16[160,96], index: 1, kind: input, shape index: {}]   ;;  %s3220_s2 = inlined_call_operand.vmem [shape: f32[1,96], index: 2, kind: input, shape index: {}]   ;;  %s3221_s3 = inlined_call_operand.vmem [shape: bf16[96,96], index: 3, kind: input, shape index: {}]   ;;  %s3222_s4 = inlined_call_operand.vmem [shape: f32[1,96], index: 4, kind: input, shape index: {}]   ;;  %s3223_s5 = inlined_call_operand.vmem [shape: bf16[96,96], index: 5, kind: input, shape index: {}]   ;;  %s3224_s6 = inlined_call_operand.vmem [shape: f32[1,96], index: 6, kind: input, shape index: {}]   ;;  %s3225_s7 = inlined_call_operand.vmem [shape: bf16[96,20], index: 7, kind: input, shape index: {}]   ;;  %s3226_s8 = inlined_call_operand.vmem [shape: f32[1,20], index: 8, kind: input, shape index: {}]   ;;  %s3227_s9 = inlined_call_operand.hbm [shape: f32[6,20], index: 9, kind: output, shape index: {}]  }
   0x1   :  { %v54_v0 = vld [vmem:[%s3218_s0 + $0xa0] sm:$0xff]  ;;  %v55_v2 = vld [vmem:[%s3218_s0 + $0xa8] sm:$0xff]  ;;  %v37_v8 = vld [vmem:[%s3218_s0 + $0x18] sm:$0xff] }
   0x2   :  { %v34_v1 = vld [vmem:[%s3218_s0] sm:$0xff]  ;;  %v215_v3 = vsel %vm154_vm0, %v54_v0, 0.0  ;;  %v35_v5 = vld [vmem:[%s3218_s0 + $0x8] sm:$0xff]  ;;  %v218_v6 = vsel %vm154_vm0, %v55_v2, 0.0  ;;  %v36_v9 = vld [vmem:[%s3218_s0 + $0x10] sm:$0xff]  ;;  %v164_v10 = vsel %vm154_vm0, %v37_v8, 0.0 }
   0x3   :  { %v155_v4 = vsel %vm154_vm0, %v34_v1, 0.0  ;;  %216 = vadd.xlane.f32.xlu1 %v215_v3  ;;  %v158_v7 = vsel %vm154_vm0, %v35_v5, 0.0  ;;  %v161_v11 = vsel %vm154_vm0, %v36_v9, 0.0  ;;  %v57_v12 = vld [vmem:[%s3218_s0 + $0xb8] sm:$0xff]  ;;  %v56_v13 = vld [vmem:[%s3218_s0 + $0xb0] sm:$0xff]  ;;  %v75_v16 = vld [vmem:[%s3218_s0 + $0x148] sm:$0xff] }
   0x4   :  { %156 = vadd.xlane.f32.xlu0 %v155_v4  ;;  %v224_v14 = vsel %vm154_vm0, %v57_v12, 0.0  ;;  %v221_v15 = vsel %vm154_vm0, %v56_v13, 0.0  ;;  %v74_v17 = vld [vmem:[%s3218_s0 + $0x140] sm:$0xff]  ;;  %v278_v18 = vsel %vm154_vm0, %v75_v16, 0.0  ;;  %v77_v20 = vld [vmem:[%s3218_s0 + $0x158] sm:$0xff]  ;;  %v76_v21 = vld [vmem:[%s3218_s0 + $0x150] sm:$0xff] }
   0x5   :  { %v275_v19 = vsel %vm154_vm0, %v74_v17, 0.0  ;;  %v284_v22 = vsel %vm154_vm0, %v77_v20, 0.0  ;;  %v281_v23 = vsel %vm154_vm0, %v76_v21, 0.0  ;;  %v95_v24 = vld [vmem:[%s3218_s0 + $0x1e8] sm:$0xff]  ;;  %v94_v25 = vld [vmem:[%s3218_s0 + $0x1e0] sm:$0xff]  ;;  %v97_v35 = vld [vmem:[%s3218_s0 + $0x1f8] sm:$0xff] }
   0x6   :  { %v338_v26 = vsel %vm154_vm0, %v95_v24, 0.0  ;;  %v335_v27 = vsel %vm154_vm0, %v94_v25, 0.0  ;;  %v39_v28 = vld [vmem:[%s3218_s0 + $0x28] sm:$0xff]  ;;  %v38_v29 = vld [vmem:[%s3218_s0 + $0x20] sm:$0xff]  ;;  %v96_v37 = vld [vmem:[%s3218_s0 + $0x1f0] sm:$0xff]  ;;  %v344_v38 = vsel %vm154_vm0, %v97_v35, 0.0 }
   0x7   :  { %219 = vadd.xlane.f32.xlu1 %v218_v6  ;;  %v59_v30 = vld [vmem:[%s3218_s0 + $0xc8] sm:$0xff]  ;;  %v170_v31 = vsel %vm154_vm0, %v39_v28, 0.0  ;;  %v167_v32 = vsel %vm154_vm0, %v38_v29, 0.0  ;;  %v58_v33 = vld [vmem:[%s3218_s0 + $0xc0] sm:$0xff]  ;;  %v341_v40 = vsel %vm154_vm0, %v96_v37, 0.0  ;;  %v117_v47 = vld [vmem:[%s3218_s0 + $0x298] sm:$0xff] }
   0x8   :  { %159 = vadd.xlane.f32.xlu0 %v158_v7  ;;  %v230_v34 = vsel %vm154_vm0, %v59_v30, 0.0  ;;  %v227_v36 = vsel %vm154_vm0, %v58_v33, 0.0  ;;  %v115_v39 = vld [vmem:[%s3218_s0 + $0x288] sm:$0xff]  ;;  %v114_v41 = vld [vmem:[%s3218_s0 + $0x280] sm:$0xff]  ;;  %v116_v49 = vld [vmem:[%s3218_s0 + $0x290] sm:$0xff]  ;;  %v404_v50 = vsel %vm154_vm0, %v117_v47, 0.0 }
   0x9   :  { %v398_v42 = vsel %vm154_vm0, %v115_v39, 0.0  ;;  %v79_v43 = vld [vmem:[%s3218_s0 + $0x168] sm:$0xff]  ;;  %v395_v44 = vsel %vm154_vm0, %v114_v41, 0.0  ;;  %v78_v45 = vld [vmem:[%s3218_s0 + $0x160] sm:$0xff]  ;;  %v401_v52 = vsel %vm154_vm0, %v116_v49, 0.0  ;;  %v41_v56 = vld [vmem:[%s3218_s0 + $0x38] sm:$0xff] }
   0xa   :  { %v290_v46 = vsel %vm154_vm0, %v79_v43, 0.0  ;;  %v287_v48 = vsel %vm154_vm0, %v78_v45, 0.0  ;;  %v135_v51 = vld [vmem:[%s3218_s0 + $0x328] sm:$0xff]  ;;  %v134_v53 = vld [vmem:[%s3218_s0 + $0x320] sm:$0xff]  ;;  %v40_v57 = vld [vmem:[%s3218_s0 + $0x30] sm:$0xff] }
   0xb   :  { %165 = vadd.xlane.f32.xlu1 %v164_v10  ;;  %v458_v54 = vsel %vm154_vm0, %v135_v51, 0.0  ;;  %v455_v55 = vsel %vm154_vm0, %v134_v53, 0.0 }
   0xc   :  { %162 = vadd.xlane.f32.xlu0 %v161_v11 }
   0xf   :  { %225 = vadd.xlane.f32.xlu1 %v224_v14 }
  0x10   :  { %222 = vadd.xlane.f32.xlu0 %v221_v15 }
  0x13   :  { %279 = vadd.xlane.f32.xlu1 %v278_v18 }
  0x14   :  { %276 = vadd.xlane.f32.xlu0 %v275_v19 }
  0x17   :  { %285 = vadd.xlane.f32.xlu1 %v284_v22 }
  0x18   :  { %282 = vadd.xlane.f32.xlu0 %v281_v23 }
  0x1b   :  { %339 = vadd.xlane.f32.xlu1 %v338_v26 }
  0x1c   :  { %336 = vadd.xlane.f32.xlu0 %v335_v27 }
  0x1f   :  { %171 = vadd.xlane.f32.xlu1 %v170_v31 }
  0x20   :  { %168 = vadd.xlane.f32.xlu0 %v167_v32 }
  0x23   :  { %231 = vadd.xlane.f32.xlu1 %v230_v34 }
  0x24   :  { %228 = vadd.xlane.f32.xlu0 %v227_v36 }
  0x27   :  { %345 = vadd.xlane.f32.xlu1 %v344_v38 }
  0x28   :  { %342 = vadd.xlane.f32.xlu0 %v341_v40 }
  0x2b   :  { %399 = vadd.xlane.f32.xlu1 %v398_v42 }
  0x2c   :  { %396 = vadd.xlane.f32.xlu0 %v395_v44 }
  0x2f   :  { %291 = vadd.xlane.f32.xlu1 %v290_v46 }
  0x30   :  { %288 = vadd.xlane.f32.xlu0 %v287_v48 }
  0x33   :  { %405 = vadd.xlane.f32.xlu1 %v404_v50 }
  0x34   :  { %402 = vadd.xlane.f32.xlu0 %v401_v52 }
  0x37   :  { %459 = vadd.xlane.f32.xlu1 %v458_v54 }
  0x38   :  { %456 = vadd.xlane.f32.xlu0 %v455_v55 }
  0x39   :  { %14 = vsyncpa [#allocation3], 0  ;;  %v176_v58 = vsel %vm154_vm0, %v41_v56, 0.0  ;;  %v173_v59 = vsel %vm154_vm0, %v40_v57, 0.0  ;;  %v61_v60 = vld [vmem:[%s3218_s0 + $0xd8] sm:$0xff]  ;;  %v60_v61 = vld [vmem:[%s3218_s0 + $0xd0] sm:$0xff] }
  0x3a   :  { %v236_v62 = vsel %vm154_vm0, %v61_v60, 0.0  ;;  %v233_v63 = vsel %vm154_vm0, %v60_v61, 0.0  ;;  %v99_v0 = vld [vmem:[%s3218_s0 + $0x208] sm:$0xff]  ;;  %v98_v1 = vld [vmem:[%s3218_s0 + $0x200] sm:$0xff]  ;;  %v137_v4 = vld [vmem:[%s3218_s0 + $0x338] sm:$0xff]  ;;  %vm914_vm1 = vcmask 130112  }
  0x3b   :  { %177 = vadd.xlane.f32.xlu1 %v176_v58  ;;  %v350_v2 = vsel %vm154_vm0, %v99_v0, 0.0  ;;  %v347_v3 = vsel %vm154_vm0, %v98_v1, 0.0  ;;  %v136_v5 = vld [vmem:[%s3218_s0 + $0x330] sm:$0xff]  ;;  %v464_v6 = vsel %vm154_vm0, %v137_v4, 0.0  ;;  %v81_v8 = vld [vmem:[%s3218_s0 + $0x178] sm:$0xff]  ;;  %v119_v12 = vld [vmem:[%s3218_s0 + $0x2a8] sm:$0xff] }
  0x3c   :  { %174 = vadd.xlane.f32.xlu0 %v173_v59  ;;  %v461_v7 = vsel %vm154_vm0, %v136_v5, 0.0  ;;  %v80_v9 = vld [vmem:[%s3218_s0 + $0x170] sm:$0xff]  ;;  %v296_v10 = vsel %vm154_vm0, %v81_v8, 0.0  ;;  %v118_v13 = vld [vmem:[%s3218_s0 + $0x2a0] sm:$0xff]  ;;  %v410_v14 = vsel %vm154_vm0, %v119_v12, 0.0  ;;  %v43_v16 = vld [vmem:[%s3218_s0 + $0x48] sm:$0xff] }
  0x3d   :  { %v293_v11 = vsel %vm154_vm0, %v80_v9, 0.0  ;;  %v407_v15 = vsel %vm154_vm0, %v118_v13, 0.0  ;;  %v42_v17 = vld [vmem:[%s3218_s0 + $0x40] sm:$0xff]  ;;  %v182_v18 = vsel %vm154_vm0, %v43_v16, 0.0  ;;  %v63_v20 = vld [vmem:[%s3218_s0 + $0xe8] sm:$0xff]  ;;  %v101_v24 = vld [vmem:[%s3218_s0 + $0x218] sm:$0xff]  ;;  %v903_v16 = vlaneseq }
  0x3e   :  { %v179_v19 = vsel %vm154_vm0, %v42_v17, 0.0  ;;  %v62_v21 = vld [vmem:[%s3218_s0 + $0xe0] sm:$0xff]  ;;  %v242_v22 = vsel %vm154_vm0, %v63_v20, 0.0  ;;  %v100_v25 = vld [vmem:[%s3218_s0 + $0x210] sm:$0xff]  ;;  %v356_v26 = vsel %vm154_vm0, %v101_v24, 0.0  ;;  %v139_v28 = vld [vmem:[%s3218_s0 + $0x348] sm:$0xff] }
  0x3f   :  { %237 = vadd.xlane.f32.xlu1 %v236_v62  ;;  %v239_v23 = vsel %vm154_vm0, %v62_v21, 0.0  ;;  %v353_v27 = vsel %vm154_vm0, %v100_v25, 0.0  ;;  %v138_v29 = vld [vmem:[%s3218_s0 + $0x340] sm:$0xff]  ;;  %v470_v30 = vsel %vm154_vm0, %v139_v28, 0.0  ;;  %v83_v32 = vld [vmem:[%s3218_s0 + $0x188] sm:$0xff]  ;;  %v121_v36 = vld [vmem:[%s3218_s0 + $0x2b8] sm:$0xff] }
  0x40   :  { %234 = vadd.xlane.f32.xlu0 %v233_v63  ;;  %v467_v31 = vsel %vm154_vm0, %v138_v29, 0.0  ;;  %v82_v33 = vld [vmem:[%s3218_s0 + $0x180] sm:$0xff]  ;;  %v302_v34 = vsel %vm154_vm0, %v83_v32, 0.0  ;;  %v120_v37 = vld [vmem:[%s3218_s0 + $0x2b0] sm:$0xff]  ;;  %v416_v38 = vsel %vm154_vm0, %v121_v36, 0.0  ;;  %v45_v40 = vld [vmem:[%s3218_s0 + $0x58] sm:$0xff] }
  0x41   :  { %v299_v35 = vsel %vm154_vm0, %v82_v33, 0.0  ;;  %v413_v39 = vsel %vm154_vm0, %v120_v37, 0.0  ;;  %v44_v41 = vld [vmem:[%s3218_s0 + $0x50] sm:$0xff]  ;;  %v188_v42 = vsel %vm154_vm0, %v45_v40, 0.0  ;;  %v65_v44 = vld [vmem:[%s3218_s0 + $0xf8] sm:$0xff]  ;;  %v103_v48 = vld [vmem:[%s3218_s0 + $0x228] sm:$0xff] }
  0x42   :  { %v185_v43 = vsel %vm154_vm0, %v44_v41, 0.0  ;;  %v64_v45 = vld [vmem:[%s3218_s0 + $0xf0] sm:$0xff]  ;;  %v248_v46 = vsel %vm154_vm0, %v65_v44, 0.0  ;;  %v102_v49 = vld [vmem:[%s3218_s0 + $0x220] sm:$0xff]  ;;  %v362_v50 = vsel %vm154_vm0, %v103_v48, 0.0  ;;  %v141_v52 = vld [vmem:[%s3218_s0 + $0x358] sm:$0xff] }
  0x43   :  { %351 = vadd.xlane.f32.xlu1 %v350_v2  ;;  %v245_v47 = vsel %vm154_vm0, %v64_v45, 0.0  ;;  %v359_v51 = vsel %vm154_vm0, %v102_v49, 0.0  ;;  %v140_v53 = vld [vmem:[%s3218_s0 + $0x350] sm:$0xff]  ;;  %v476_v54 = vsel %vm154_vm0, %v141_v52, 0.0  ;;  %v85_v56 = vld [vmem:[%s3218_s0 + $0x198] sm:$0xff]  ;;  %v123_v60 = vld [vmem:[%s3218_s0 + $0x2c8] sm:$0xff] }
  0x44   :  { %348 = vadd.xlane.f32.xlu0 %v347_v3  ;;  %v473_v55 = vsel %vm154_vm0, %v140_v53, 0.0  ;;  %v84_v57 = vld [vmem:[%s3218_s0 + $0x190] sm:$0xff]  ;;  %v308_v58 = vsel %vm154_vm0, %v85_v56, 0.0  ;;  %v122_v61 = vld [vmem:[%s3218_s0 + $0x2c0] sm:$0xff]  ;;  %v422_v62 = vsel %vm154_vm0, %v123_v60, 0.0  ;;  %v47_v0 = vld [vmem:[%s3218_s0 + $0x68] sm:$0xff] }
  0x45   :  { %v305_v59 = vsel %vm154_vm0, %v84_v57, 0.0  ;;  %v419_v63 = vsel %vm154_vm0, %v122_v61, 0.0  ;;  %v46_v1 = vld [vmem:[%s3218_s0 + $0x60] sm:$0xff]  ;;  %v194_v2 = vsel %vm154_vm0, %v47_v0, 0.0  ;;  %v51_v4 = vld [vmem:[%s3218_s0 + $0x88] sm:$0xff]  ;;  %v105_v17 = vld [vmem:[%s3218_s0 + $0x238] sm:$0xff] }
  0x46   :  { %v191_v3 = vsel %vm154_vm0, %v46_v1, 0.0  ;;  %v50_v5 = vld [vmem:[%s3218_s0 + $0x80] sm:$0xff]  ;;  %v67_v8 = vld [vmem:[%s3218_s0 + $0x108] sm:$0xff]  ;;  %v368_v21 = vsel %vm154_vm0, %v105_v17, 0.0  ;;  %v53_v33 = vld [vmem:[%s3218_s0 + $0x98] sm:$0xff]  ;;  %vm921_vm2 = vcmask 195712  }
  0x47   :  { %465 = vadd.xlane.f32.xlu1 %v464_v6  ;;  %v206_v6 = vsel %vm154_vm0, %v51_v4, 0.0  ;;  %v66_v9 = vld [vmem:[%s3218_s0 + $0x100] sm:$0xff]  ;;  %v71_v12 = vld [vmem:[%s3218_s0 + $0x128] sm:$0xff]  ;;  %v52_v37 = vld [vmem:[%s3218_s0 + $0x90] sm:$0xff]  ;;  %vm928_vm3 = vcmask 261312   ;;  %vm935_vm4 = vcmask 326912  }
  0x48   :  { %462 = vadd.xlane.f32.xlu0 %v461_v7  ;;  %v203_v7 = vsel %vm154_vm0, %v50_v5, 0.0  ;;  %v70_v13 = vld [vmem:[%s3218_s0 + $0x120] sm:$0xff]  ;;  %v143_v24 = vld [vmem:[%s3218_s0 + $0x368] sm:$0xff]  ;;  %v72_v53 = vld [vmem:[%s3218_s0 + $0x130] sm:$0xff]  ;;  %vm942_vm5 = vcmask 392512   ;;  %vm949_vm6 = vcmask 458112  }
  0x49   :  { %v142_v25 = vld [vmem:[%s3218_s0 + $0x360] sm:$0xff]  ;;  %v87_v0 = vld [vmem:[%s3218_s0 + $0x1a8] sm:$0xff]  ;;  %v269_v4 = vsel %vm154_vm0, %v72_v53, 0.0  ;;  %vm956_vm7 = vcmask 523712   ;;  %vm963_vm8 = vcmask 589312   ;;  %vm970_vm9 = vcmask 654912  }
  0x4a   :  { %v479_v32 = vsel %vm154_vm0, %v142_v25, 0.0  ;;  %v86_v1 = vld [vmem:[%s3218_s0 + $0x1a0] sm:$0xff]  ;;  %vm977_vm10 = vcmask 720512   ;;  %vm984_vm11 = vcmask 786112   ;;  %vm991_vm12 = vcmask 851712  }
  0x4b   :  { %297 = vadd.xlane.f32.xlu1 %v296_v10  ;;  %v254_v10 = vsel %vm154_vm0, %v67_v8, 0.0  ;;  %vm998_vm13 = vcmask 917312   ;;  %vm1523_vm14 = vcmask 1041409   ;;  %vm1005_vm15 = vcmask 982912  }
  0x4c   :  { %294 = vadd.xlane.f32.xlu0 %v293_v11  ;;  %v251_v11 = vsel %vm154_vm0, %v66_v9, 0.0  ;;  %v314_v9 = vsel %vm154_vm0, %v87_v0, 0.0 }
  0x4f   :  { %411 = vadd.xlane.f32.xlu1 %v410_v14  ;;  %v266_v14 = vsel %vm154_vm0, %v71_v12, 0.0 }
  0x50   :  { %408 = vadd.xlane.f32.xlu0 %v407_v15  ;;  %v263_v15 = vsel %vm154_vm0, %v70_v13, 0.0 }
  0x53   :  { %183 = vadd.xlane.f32.xlu1 %v182_v18  ;;  %v104_v18 = vld [vmem:[%s3218_s0 + $0x230] sm:$0xff] }
  0x54   :  { %180 = vadd.xlane.f32.xlu0 %v179_v19 }
  0x57   :  { %243 = vadd.xlane.f32.xlu1 %v242_v22  ;;  %v365_v22 = vsel %vm154_vm0, %v104_v18, 0.0 }
  0x58   :  { %240 = vadd.xlane.f32.xlu0 %v239_v23  ;;  %v2474_v23 = vand.u32 127, %v903_v16 }
  0x5a   :  { %v909_v28 = vadd.s32 4294967288, %v2474_v23  ;;  %v916_v40 = vadd.s32 4294967280, %v2474_v23  ;;  %v923_v41 = vadd.s32 4294967272, %v2474_v23 }
  0x5b   :  { %357 = vadd.xlane.f32.xlu1 %v356_v26  ;;  %v2482_v26 = vshrl.u32 %v903_v16, 7 }
  0x5c   :  { %354 = vadd.xlane.f32.xlu0 %v353_v27 }
  0x5d   :  { %v2514_v56 = vsub.s32 %v923_v41, %v2482_v26 }
  0x5f   :  { %471 = vadd.xlane.f32.xlu1 %v470_v30 }
  0x60   :  { %468 = vadd.xlane.f32.xlu0 %v467_v31  ;;  %v482_v31 = vsel %vm154_vm0, %v143_v24, 0.0 }
  0x63   :  { %303 = vadd.xlane.f32.xlu1 %v302_v34 }
  0x64   :  { %300 = vadd.xlane.f32.xlu0 %v299_v35 }
  0x67   :  { %417 = vadd.xlane.f32.xlu1 %v416_v38 }
  0x68   :  { %414 = vadd.xlane.f32.xlu0 %v413_v39 }
  0x6b   :  { %189 = vadd.xlane.f32.xlu1 %v188_v42  ;;  %v2497_v42 = vsub.s32 %v2474_v23, %v2482_v26 }
  0x6c   :  { %186 = vadd.xlane.f32.xlu0 %v185_v43  ;;  %v2500_v43 = vsub.s32 %v909_v28, %v2482_v26 }
  0x6f   :  { %249 = vadd.xlane.f32.xlu1 %v248_v46  ;;  %v212_v46 = vsel %vm154_vm0, %v53_v33, 0.0 }
  0x70   :  { %246 = vadd.xlane.f32.xlu0 %v245_v47  ;;  %v73_v47 = vld [vmem:[%s3218_s0 + $0x138] sm:$0xff] }
  0x71   :  { %v272_v57 = vsel %vm154_vm0, %v73_v47, 0.0 }
  0x73   :  { %363 = vadd.xlane.f32.xlu1 %v362_v50  ;;  %v209_v50 = vsel %vm154_vm0, %v52_v37, 0.0 }
  0x74   :  { %360 = vadd.xlane.f32.xlu0 %v359_v51 }
  0x77   :  { %477 = vadd.xlane.f32.xlu1 %v476_v54 }
  0x78   :  { %474 = vadd.xlane.f32.xlu0 %v473_v55  ;;  %v2511_v55 = vsub.s32 %v916_v40, %v2482_v26  ;;  %v124_v40 = vld [vmem:[%s3218_s0 + $0x2d0] sm:$0xff] }
  0x7b   :  { %309 = vadd.xlane.f32.xlu1 %v308_v58 }
  0x7c   :  { %306 = vadd.xlane.f32.xlu0 %v305_v59 }
  0x7f   :  { %423 = vadd.xlane.f32.xlu1 %v422_v62 }
  0x80   :  { %420 = vadd.xlane.f32.xlu0 %v419_v63 }
  0x83   :  { %195 = vadd.xlane.f32.xlu1 %v194_v2 }
  0x84   :  { %192 = vadd.xlane.f32.xlu0 %v191_v3 }
  0x87   :  { %207 = vadd.xlane.f32.xlu1 %v206_v6 }
  0x88   :  { %204 = vadd.xlane.f32.xlu0 %v203_v7 }
  0x8b   :  { %255 = vadd.xlane.f32.xlu1 %v254_v10  ;;  %v311_v10 = vsel %vm154_vm0, %v86_v1, 0.0 }
  0x8c   :  { %252 = vadd.xlane.f32.xlu0 %v251_v11 }
  0x8f   :  { %267 = vadd.xlane.f32.xlu1 %v266_v14 }
  0x90   :  { %264 = vadd.xlane.f32.xlu0 %v263_v15  ;;  %v217_v19 = vpop.xlane.xlu1 %216 }
  0x91   :  { %v157_v20 = vpop.xlane.xlu0 %156  ;;  %v536_v27 = vmul.f32 0.020408163, %v217_v19 }
  0x92   :  { %v516_v34 = vmul.f32 0.020408163, %v157_v20 }
  0x93   :  { %369 = vadd.xlane.f32.xlu1 %v368_v21  ;;  %v91_v21 = vld [vmem:[%s3218_s0 + $0x1c8] sm:$0xff] }
  0x94   :  { %366 = vadd.xlane.f32.xlu0 %v365_v22  ;;  %v220_v29 = vpop.xlane.xlu1 %219  ;;  %v90_v22 = vld [vmem:[%s3218_s0 + $0x1c0] sm:$0xff]  ;;  %v326_v33 = vsel %vm154_vm0, %v91_v21, 0.0 }
  0x95   :  { %v160_v30 = vpop.xlane.xlu0 %159  ;;  %v537_v35 = vmul.f32 0.020408163, %v220_v29 }
  0x96   :  { %v517_v36 = vmul.f32 0.020408163, %v160_v30 }
  0x97   :  { %v646_v38 = vpack.c.bf16 %v537_v35, %v536_v27  ;;  %483 = vadd.xlane.f32.xlu1 %v482_v31 }
  0x98   :  { %v636_v39 = vpack.c.bf16 %v517_v36, %v516_v34  ;;  %480 = vadd.xlane.f32.xlu0 %v479_v32  ;;  %v166_v44 = vpop.xlane.xlu1 %165  ;;  %v323_v34 = vsel %vm154_vm0, %v90_v22, 0.0  ;;  %v93_v22 = vld [vmem:[%s3218_s0 + $0x1d8] sm:$0xff] }
  0x99   :  { %v163_v45 = vpop.xlane.xlu0 %162  ;;  %v519_v51 = vmul.f32 0.020408163, %v166_v44  ;;  %v803_v54 = vunpack.c.l.b16 %v646_v38  ;;  %v804_v58 = vunpack.c.h.b16 %v646_v38 }
  0x9a   :  { %v783_v48 = vunpack.c.l.b16 %v636_v39  ;;  %v784_v49 = vunpack.c.h.b16 %v636_v39  ;;  %v518_v52 = vmul.f32 0.020408163, %v163_v45  ;;  %v125_v39 = vld [vmem:[%s3218_s0 + $0x2d8] sm:$0xff] }
  0x9b   :  { %213 = vadd.xlane.f32.xlu1 %v212_v46  ;;  %v1036_v7 = vrot.slane %v803_v54, %v2497_v42  ;;  %v1040_v11 = vrot.slane %v804_v58, %v2500_v43  ;;  %v49_v54 = vld [vmem:[%s3218_s0 + $0x78] sm:$0xff] }
  0x9c   :  { %v908_v59 = vrot.slane %v783_v48, %v2497_v42  ;;  %v913_v60 = vrot.slane %v784_v49, %v2500_v43  ;;  %v637_v61 = vpack.c.bf16 %v519_v51, %v518_v52  ;;  %210 = vadd.xlane.f32.xlu0 %v209_v50  ;;  %v226_v62 = vpop.xlane.xlu1 %225  ;;  %v428_v48 = vsel %vm154_vm0, %v125_v39, 0.0 }
  0x9d   :  { %v223_v63 = vpop.xlane.xlu0 %222  ;;  %v539_v2 = vmul.f32 0.020408163, %v226_v62  ;;  %v1041_v30 = vsel %vm914_vm1, %v1040_v11, %v1036_v7  ;;  %v425_v49 = vsel %vm154_vm0, %v124_v40, 0.0  ;;  %v937_v62 = vadd.s32 4294967256, %v2474_v23 }
  0x9e   :  { %v538_v3 = vmul.f32 0.020408163, %v223_v63  ;;  %v785_v5 = vunpack.c.l.b16 %v637_v61  ;;  %v786_v6 = vunpack.c.h.b16 %v637_v61  ;;  %v915_v12 = vsel %vm914_vm1, %v913_v60, %v908_v59  ;;  %v48_v59 = vld [vmem:[%s3218_s0 + $0x70] sm:$0xff] }
  0x9f   :  { %273 = vadd.xlane.f32.xlu1 %v272_v57  ;;  %v930_v61 = vadd.s32 4294967264, %v2474_v23  ;;  %v197_v7 = vsel %vm154_vm0, %v48_v59, 0.0 }
  0xa0   :  { %v647_v8 = vpack.c.bf16 %v539_v2, %v538_v3  ;;  %v920_v13 = vrot.slane %v785_v5, %v2511_v55  ;;  %v927_v14 = vrot.slane %v786_v6, %v2514_v56  ;;  %270 = vadd.xlane.f32.xlu0 %v269_v4  ;;  %v280_v15 = vpop.xlane.xlu1 %279  ;;  %v200_v3 = vsel %vm154_vm0, %v49_v54, 0.0 }
  0xa1   :  { %v277_v16 = vpop.xlane.xlu0 %276  ;;  %v557_v19 = vmul.f32 0.020408163, %v280_v15 }
  0xa2   :  { %v805_v17 = vunpack.c.l.b16 %v647_v8  ;;  %v806_v18 = vunpack.c.h.b16 %v647_v8  ;;  %v556_v20 = vmul.f32 0.020408163, %v277_v16  ;;  %v922_v24 = vsel %vm921_vm2, %v920_v13, %v915_v12  ;;  %v69_v8 = vld [vmem:[%s3218_s0 + $0x118] sm:$0xff] }
  0xa3   :  { %v2541_v25 = vsel %vm928_vm3, %v927_v14, %v922_v24  ;;  %315 = vadd.xlane.f32.xlu1 %v314_v9  ;;  %v2586_v12 = vsub.s32 %v930_v61, %v2482_v26  ;;  %v2589_v13 = vsub.s32 %v937_v62, %v2482_v26  ;;  %v111_v62 = vld [vmem:[%s3218_s0 + $0x268] sm:$0xff] }
  0xa4   :  { %v1045_v27 = vrot.slane %v805_v17, %v2511_v55  ;;  %v1050_v28 = vrot.slane %v806_v18, %v2514_v56  ;;  %v656_v29 = vpack.c.bf16 %v557_v19, %v556_v20  ;;  %312 = vadd.xlane.f32.xlu0 %v311_v10  ;;  %v286_v31 = vpop.xlane.xlu1 %285  ;;  %v68_v10 = vld [vmem:[%s3218_s0 + $0x110] sm:$0xff]  ;;  %v260_v17 = vsel %vm154_vm0, %v69_v8, 0.0 }
  0xa5   :  { %v283_v32 = vpop.xlane.xlu0 %282  ;;  %v559_v38 = vmul.f32 0.020408163, %v286_v31  ;;  %v257_v21 = vsel %vm154_vm0, %v68_v10, 0.0 }
  0xa6   :  { %v1046_v35 = vsel %vm921_vm2, %v1045_v27, %v1041_v30  ;;  %v823_v36 = vunpack.c.l.b16 %v656_v29  ;;  %v824_v37 = vunpack.c.h.b16 %v656_v29  ;;  %v558_v44 = vmul.f32 0.020408163, %v283_v32  ;;  %v92_v27 = vld [vmem:[%s3218_s0 + $0x1d0] sm:$0xff] }
  0xa7   :  { %v2556_v41 = vsel %vm928_vm3, %v1050_v28, %v1046_v35  ;;  %327 = vadd.xlane.f32.xlu1 %v326_v33  ;;  %v332_v35 = vsel %vm154_vm0, %v93_v22, 0.0 }
  0xa8   :  { %v657_v45 = vpack.c.bf16 %v559_v38, %v558_v44  ;;  %324 = vadd.xlane.f32.xlu0 %v323_v34  ;;  %v340_v46 = vpop.xlane.xlu1 %339  ;;  %v1134_v50 = vrot.slane %v823_v36, %v2497_v42  ;;  %v1138_v51 = vrot.slane %v824_v37, %v2500_v43  ;;  %v107_v36 = vld [vmem:[%s3218_s0 + $0x248] sm:$0xff]  ;;  %v106_v37 = vld [vmem:[%s3218_s0 + $0x240] sm:$0xff]  ;;  %v329_v44 = vsel %vm154_vm0, %v92_v27, 0.0  ;;  %v89_v27 = vld [vmem:[%s3218_s0 + $0x1b8] sm:$0xff] }
  0xa9   :  { %v337_v47 = vpop.xlane.xlu0 %336  ;;  %v577_v52 = vmul.f32 0.020408163, %v340_v46 }
  0xaa   :  { %v576_v53 = vmul.f32 0.020408163, %v337_v47  ;;  %v825_v57 = vunpack.c.l.b16 %v657_v45  ;;  %v826_v58 = vunpack.c.h.b16 %v657_v45  ;;  %v1139_v4 = vsel %vm914_vm1, %v1138_v51, %v1134_v50 }
  0xab   :  { %429 = vadd.xlane.f32.xlu1 %v428_v48  ;;  %v371_v50 = vsel %vm154_vm0, %v106_v37, 0.0 }
  0xac   :  { %v666_v60 = vpack.c.bf16 %v577_v52, %v576_v53  ;;  %v1143_v63 = vrot.slane %v825_v57, %v2511_v55  ;;  %v1148_v0 = vrot.slane %v826_v58, %v2514_v56  ;;  %426 = vadd.xlane.f32.xlu0 %v425_v49  ;;  %v172_v1 = vpop.xlane.xlu1 %171  ;;  %v374_v49 = vsel %vm154_vm0, %v107_v36, 0.0 }
  0xad   :  { %v169_v2 = vpop.xlane.xlu0 %168  ;;  %v521_v5 = vmul.f32 0.020408163, %v172_v1 }
  0xae   :  { %v520_v6 = vmul.f32 0.020408163, %v169_v2  ;;  %v1144_v9 = vsel %vm921_vm2, %v1143_v63, %v1139_v4  ;;  %v843_v30 = vunpack.c.l.b16 %v666_v60  ;;  %v844_v31 = vunpack.c.h.b16 %v666_v60 }
  0xaf   :  { %v2583_v11 = vsel %vm928_vm3, %v1148_v0, %v1144_v9  ;;  %201 = vadd.xlane.f32.xlu1 %v200_v3  ;;  %v110_v0 = vld [vmem:[%s3218_s0 + $0x260] sm:$0xff] }
  0xb0   :  { %v638_v14 = vpack.c.bf16 %v521_v5, %v520_v6  ;;  %198 = vadd.xlane.f32.xlu0 %v197_v7  ;;  %v232_v15 = vpop.xlane.xlu1 %231  ;;  %v1232_v51 = vrot.slane %v843_v30, %v2497_v42  ;;  %v1236_v52 = vrot.slane %v844_v31, %v2500_v43  ;;  %v383_v10 = vsel %vm154_vm0, %v110_v0, 0.0 }
  0xb1   :  { %v229_v16 = vpop.xlane.xlu0 %228  ;;  %v541_v20 = vmul.f32 0.020408163, %v232_v15 }
  0xb2   :  { %v787_v18 = vunpack.c.l.b16 %v638_v14  ;;  %v788_v19 = vunpack.c.h.b16 %v638_v14  ;;  %v540_v24 = vmul.f32 0.020408163, %v229_v16  ;;  %v1237_v5 = vsel %vm914_vm1, %v1236_v52, %v1232_v51  ;;  %v145_v14 = vld [vmem:[%s3218_s0 + $0x378] sm:$0xff] }
  0xb3   :  { %261 = vadd.xlane.f32.xlu1 %v260_v17  ;;  %v144_v17 = vld [vmem:[%s3218_s0 + $0x370] sm:$0xff]  ;;  %v113_v51 = vld [vmem:[%s3218_s0 + $0x278] sm:$0xff] }
  0xb4   :  { %v934_v28 = vrot.slane %v787_v18, %v2586_v12  ;;  %v941_v29 = vrot.slane %v788_v19, %v2589_v13  ;;  %v648_v32 = vpack.c.bf16 %v541_v20, %v540_v24  ;;  %258 = vadd.xlane.f32.xlu0 %v257_v21  ;;  %v346_v33 = vpop.xlane.xlu1 %345  ;;  %v488_v24 = vsel %vm154_vm0, %v145_v14, 0.0 }
  0xb5   :  { %v343_v34 = vpop.xlane.xlu0 %342  ;;  %v579_v39 = vmul.f32 0.020408163, %v346_v33  ;;  %v485_v31 = vsel %vm154_vm0, %v144_v17, 0.0 }
  0xb6   :  { %v936_v38 = vsel %vm935_vm4, %v934_v28, %v2541_v25  ;;  %v578_v40 = vmul.f32 0.020408163, %v343_v34  ;;  %v807_v46 = vunpack.c.l.b16 %v648_v32  ;;  %v808_v47 = vunpack.c.h.b16 %v648_v32  ;;  %v88_v28 = vld [vmem:[%s3218_s0 + $0x1b0] sm:$0xff] }
  0xb7   :  { %v2612_v45 = vsel %vm942_vm5, %v941_v29, %v936_v38  ;;  %333 = vadd.xlane.f32.xlu1 %v332_v35  ;;  %v320_v35 = vsel %vm154_vm0, %v89_v27, 0.0  ;;  %v317_v36 = vsel %vm154_vm0, %v88_v28, 0.0 }
  0xb8   :  { %v667_v48 = vpack.c.bf16 %v579_v39, %v578_v40  ;;  %v1055_v25 = vrot.slane %v807_v46, %v2586_v12  ;;  %v1060_v53 = vrot.slane %v808_v47, %v2589_v13  ;;  %330 = vadd.xlane.f32.xlu0 %v329_v44  ;;  %v400_v54 = vpop.xlane.xlu1 %399 }
  0xb9   :  { %v397_v57 = vpop.xlane.xlu0 %396  ;;  %v597_v60 = vmul.f32 0.020408163, %v400_v54 }
  0xba   :  { %v845_v58 = vunpack.c.l.b16 %v667_v48  ;;  %v846_v59 = vunpack.c.h.b16 %v667_v48  ;;  %v596_v61 = vmul.f32 0.020408163, %v397_v57  ;;  %v1056_v63 = vsel %vm935_vm4, %v1055_v25, %v2556_v41 }
  0xbb   :  { %v2629_v1 = vsel %vm942_vm5, %v1060_v53, %v1056_v63  ;;  %375 = vadd.xlane.f32.xlu1 %v374_v49  ;;  %v386_v41 = vsel %vm154_vm0, %v111_v62, 0.0  ;;  %v944_v25 = vadd.s32 4294967248, %v2474_v23  ;;  %v112_v53 = vld [vmem:[%s3218_s0 + $0x270] sm:$0xff]  ;;  %v392_v63 = vsel %vm154_vm0, %v113_v51, 0.0 }
  0xbc   :  { %v1241_v2 = vrot.slane %v845_v58, %v2511_v55  ;;  %v1246_v3 = vrot.slane %v846_v59, %v2514_v56  ;;  %v676_v4 = vpack.c.bf16 %v597_v60, %v596_v61  ;;  %372 = vadd.xlane.f32.xlu0 %v371_v50  ;;  %v292_v6 = vpop.xlane.xlu1 %291  ;;  %v951_v61 = vadd.s32 4294967240, %v2474_v23 }
  0xbd   :  { %v289_v7 = vpop.xlane.xlu0 %288  ;;  %v561_v9 = vmul.f32 0.020408163, %v292_v6 }
  0xbe   :  { %v1242_v8 = vsel %vm921_vm2, %v1241_v2, %v1237_v5  ;;  %v560_v16 = vmul.f32 0.020408163, %v289_v7  ;;  %v863_v18 = vunpack.c.l.b16 %v676_v4  ;;  %v864_v19 = vunpack.c.h.b16 %v676_v4  ;;  %v127_v4 = vld [vmem:[%s3218_s0 + $0x2e8] sm:$0xff]  ;;  %v126_v5 = vld [vmem:[%s3218_s0 + $0x2e0] sm:$0xff] }
  0xbf   :  { %v2641_v15 = vsel %vm928_vm3, %v1246_v3, %v1242_v8  ;;  %387 = vadd.xlane.f32.xlu1 %v386_v41  ;;  %v389_v3 = vsel %vm154_vm0, %v112_v53, 0.0  ;;  %v2691_v41 = vsub.s32 %v944_v25, %v2482_v26  ;;  %v2694_v8 = vsub.s32 %v951_v61, %v2482_v26 }
  0xc0   :  { %v658_v20 = vpack.c.bf16 %v561_v9, %v560_v16  ;;  %384 = vadd.xlane.f32.xlu0 %v383_v10  ;;  %v406_v21 = vpop.xlane.xlu1 %405  ;;  %v1330_v37 = vrot.slane %v863_v18, %v2497_v42  ;;  %v1334_v38 = vrot.slane %v864_v19, %v2500_v43  ;;  %v434_v16 = vsel %vm154_vm0, %v127_v4, 0.0 }
  0xc1   :  { %v403_v22 = vpop.xlane.xlu0 %402  ;;  %v599_v29 = vmul.f32 0.020408163, %v406_v21  ;;  %v431_v17 = vsel %vm154_vm0, %v126_v5, 0.0  ;;  %v130_v21 = vld [vmem:[%s3218_s0 + $0x300] sm:$0xff] }
  0xc2   :  { %v598_v30 = vmul.f32 0.020408163, %v403_v22  ;;  %v827_v32 = vunpack.c.l.b16 %v658_v20  ;;  %v828_v33 = vunpack.c.h.b16 %v658_v20  ;;  %v1335_v60 = vsel %vm914_vm1, %v1334_v38, %v1330_v37  ;;  %v131_v20 = vld [vmem:[%s3218_s0 + $0x308] sm:$0xff]  ;;  %v109_v38 = vld [vmem:[%s3218_s0 + $0x258] sm:$0xff] }
  0xc3   :  { %489 = vadd.xlane.f32.xlu1 %v488_v24  ;;  %v380_v25 = vsel %vm154_vm0, %v109_v38, 0.0 }
  0xc4   :  { %v677_v34 = vpack.c.bf16 %v599_v29, %v598_v30  ;;  %v1153_v39 = vrot.slane %v827_v32, %v2586_v12  ;;  %v1158_v40 = vrot.slane %v828_v33, %v2589_v13  ;;  %486 = vadd.xlane.f32.xlu0 %v485_v31  ;;  %v460_v44 = vpop.xlane.xlu1 %459  ;;  %v446_v32 = vsel %vm154_vm0, %v131_v20, 0.0 }
  0xc5   :  { %v457_v46 = vpop.xlane.xlu0 %456  ;;  %v617_v49 = vmul.f32 0.020408163, %v460_v44  ;;  %v443_v33 = vsel %vm154_vm0, %v130_v21, 0.0 }
  0xc6   :  { %v865_v47 = vunpack.c.l.b16 %v677_v34  ;;  %v866_v48 = vunpack.c.h.b16 %v677_v34  ;;  %v616_v50 = vmul.f32 0.020408163, %v457_v46  ;;  %v1154_v52 = vsel %vm935_vm4, %v1153_v39, %v2583_v11  ;;  %v108_v39 = vld [vmem:[%s3218_s0 + $0x250] sm:$0xff] }
  0xc7   :  { %v2670_v54 = vsel %vm942_vm5, %v1158_v40, %v1154_v52  ;;  %321 = vadd.xlane.f32.xlu1 %v320_v35 }
  0xc8   :  { %v1339_v57 = vrot.slane %v865_v47, %v2511_v55  ;;  %v1344_v58 = vrot.slane %v866_v48, %v2514_v56  ;;  %v2674_v59 = vpack.c.bf16 %v617_v49, %v616_v50  ;;  %318 = vadd.xlane.f32.xlu0 %v317_v36  ;;  %v178_v11 = vpop.xlane.xlu1 %177 }
  0xc9   :  { %v175_v62 = vpop.xlane.xlu0 %174  ;;  %v523_v2 = vmul.f32 0.020408163, %v178_v11  ;;  %v133_v11 = vld [vmem:[%s3218_s0 + $0x318] sm:$0xff] }
  0xca   :  { %v1340_v0 = vsel %vm921_vm2, %v1339_v57, %v1335_v60  ;;  %v522_v7 = vmul.f32 0.020408163, %v175_v62  ;;  %v883_v49 = vunpack.c.l.b16 %v2674_v59  ;;  %v884_v50 = vunpack.c.h.b16 %v2674_v59  ;;  %v132_v62 = vld [vmem:[%s3218_s0 + $0x310] sm:$0xff] }
  0xcb   :  { %v2688_v6 = vsel %vm928_vm3, %v1344_v58, %v1340_v0  ;;  %393 = vadd.xlane.f32.xlu1 %v392_v63 }
  0xcc   :  { %v639_v9 = vpack.c.bf16 %v523_v2, %v522_v7  ;;  %390 = vadd.xlane.f32.xlu0 %v389_v3  ;;  %v238_v10 = vpop.xlane.xlu1 %237  ;;  %v1432_v2 = vrot.slane %v884_v50, %v2500_v43  ;;  %v452_v7 = vsel %vm154_vm0, %v133_v11, 0.0  ;;  %v965_v50 = vadd.s32 4294967224, %v2474_v23  ;;  %v128_v11 = vld [vmem:[%s3218_s0 + $0x2f0] sm:$0xff] }
  0xcd   :  { %v235_v14 = vpop.xlane.xlu0 %234  ;;  %v543_v18 = vmul.f32 0.020408163, %v238_v10 }
  0xce   :  { %v542_v19 = vmul.f32 0.020408163, %v235_v14  ;;  %v789_v22 = vunpack.c.l.b16 %v639_v9  ;;  %v790_v24 = vunpack.c.h.b16 %v639_v9  ;;  %v147_v9 = vld [vmem:[%s3218_s0 + $0x388] sm:$0xff] }
  0xcf   :  { %435 = vadd.xlane.f32.xlu1 %v434_v16 }
  0xd0   :  { %v649_v27 = vpack.c.bf16 %v543_v18, %v542_v19  ;;  %v948_v28 = vrot.slane %v789_v22, %v2691_v41  ;;  %v955_v29 = vrot.slane %v790_v24, %v2694_v8  ;;  %432 = vadd.xlane.f32.xlu0 %v431_v17  ;;  %v352_v30 = vpop.xlane.xlu1 %351  ;;  %v449_v17 = vsel %vm154_vm0, %v132_v62, 0.0  ;;  %v146_v18 = vld [vmem:[%s3218_s0 + $0x380] sm:$0xff] }
  0xd1   :  { %v349_v31 = vpop.xlane.xlu0 %348  ;;  %v581_v36 = vmul.f32 0.020408163, %v352_v30  ;;  %v494_v24 = vsel %vm154_vm0, %v147_v9, 0.0 }
  0xd2   :  { %v809_v34 = vunpack.c.l.b16 %v649_v27  ;;  %v810_v35 = vunpack.c.h.b16 %v649_v27  ;;  %v580_v37 = vmul.f32 0.020408163, %v349_v31  ;;  %v950_v40 = vsel %vm949_vm6, %v948_v28, %v2612_v45 }
  0xd3   :  { %v2717_v44 = vsel %vm956_vm7, %v955_v29, %v950_v40  ;;  %447 = vadd.xlane.f32.xlu1 %v446_v32  ;;  %v377_v45 = vsel %vm154_vm0, %v108_v39, 0.0  ;;  %v491_v31 = vsel %vm154_vm0, %v146_v18, 0.0  ;;  %v958_v39 = vadd.s32 4294967232, %v2474_v23  ;;  %v153_v18 = vld [vmem:[%s3218_s0 + $0x3b8] sm:$0xff] }
  0xd4   :  { %v1065_v46 = vrot.slane %v809_v34, %v2691_v41  ;;  %v1070_v47 = vrot.slane %v810_v35, %v2694_v8  ;;  %v668_v48 = vpack.c.bf16 %v581_v36, %v580_v37  ;;  %444 = vadd.xlane.f32.xlu0 %v443_v33  ;;  %v466_v51 = vpop.xlane.xlu1 %465  ;;  %v151_v36 = vld [vmem:[%s3218_s0 + $0x3a8] sm:$0xff]  ;;  %v150_v37 = vld [vmem:[%s3218_s0 + $0x3a0] sm:$0xff] }
  0xd5   :  { %v463_v52 = vpop.xlane.xlu0 %462  ;;  %v619_v60 = vmul.f32 0.020408163, %v466_v51 }
  0xd6   :  { %v1066_v53 = vsel %vm949_vm6, %v1065_v46, %v2629_v1  ;;  %v847_v57 = vunpack.c.l.b16 %v668_v48  ;;  %v848_v58 = vunpack.c.h.b16 %v668_v48  ;;  %v618_v59 = vmul.f32 0.020408163, %v463_v52 }
  0xd7   :  { %v2731_v61 = vsel %vm956_vm7, %v1070_v47, %v1066_v53  ;;  %381 = vadd.xlane.f32.xlu1 %v380_v25  ;;  %v1428_v1 = vrot.slane %v883_v49, %v2497_v42  ;;  %v506_v52 = vsel %vm154_vm0, %v151_v36, 0.0  ;;  %v503_v25 = vsel %vm154_vm0, %v150_v37, 0.0  ;;  %v149_v37 = vld [vmem:[%s3218_s0 + $0x398] sm:$0xff] }
  0xd8   :  { %v1251_v63 = vrot.slane %v847_v57, %v2586_v12  ;;  %v1256_v0 = vrot.slane %v848_v58, %v2589_v13  ;;  %v687_v3 = vpack.c.bf16 %v619_v60, %v618_v59  ;;  %378 = vadd.xlane.f32.xlu0 %v377_v45  ;;  %v298_v4 = vpop.xlane.xlu1 %297  ;;  %v129_v60 = vld [vmem:[%s3218_s0 + $0x2f8] sm:$0xff] }
  0xd9   :  { %v295_v5 = vpop.xlane.xlu0 %294  ;;  %v563_v14 = vmul.f32 0.020408163, %v298_v4  ;;  %v1433_v27 = vsel %vm914_vm1, %v1432_v2, %v1428_v1  ;;  %v2791_v1 = vsub.s32 %v958_v39, %v2482_v26  ;;  %v2124_v2 = vmov 0  }
  0xda   :  { %v1252_v10 = vsel %vm935_vm4, %v1251_v63, %v2641_v15  ;;  %v562_v16 = vmul.f32 0.020408163, %v295_v5  ;;  %v885_v20 = vunpack.c.l.b16 %v687_v3  ;;  %v886_v21 = vunpack.c.h.b16 %v687_v3  ;;  %v2072_v63 = vld [vmem:[%s3219_s1] sm:$0xff]   ;;  %1605 = vmatprep.subr.bf16.mxu0 %v2124_v2 }
  0xdb   :  { %v2751_v19 = vsel %vm942_vm5, %v1256_v0, %v1252_v10  ;;  %453 = vadd.xlane.f32.xlu1 %v452_v7  ;;  %v2795_v3 = vsub.s32 %v965_v50, %v2482_v26  ;;  %v440_v9 = vsel %vm154_vm0, %v129_v60, 0.0  ;;  %v437_v10 = vsel %vm154_vm0, %v128_v11, 0.0  ;;  %1606 = vmatpush1.bf16.msra.mxu0 %v2072_v63 }
  0xdc   :  { %v659_v22 = vpack.c.bf16 %v563_v14, %v562_v16  ;;  %v1437_v15 = vrot.slane %v885_v20, %v2511_v55  ;;  %v1442_v28 = vrot.slane %v886_v21, %v2514_v56  ;;  %450 = vadd.xlane.f32.xlu0 %v449_v17  ;;  %v412_v29 = vpop.xlane.xlu1 %411  ;;  %v152_v20 = vld [vmem:[%s3218_s0 + $0x3b0] sm:$0xff]  ;;  %1607 = vmatprep.subr.bf16.mxu0 %v2124_v2 }
  0xdd   :  { %v409_v30 = vpop.xlane.xlu0 %408  ;;  %v601_v34 = vmul.f32 0.020408163, %v412_v29 }
  0xde   :  { %v829_v32 = vunpack.c.l.b16 %v659_v22  ;;  %v830_v33 = vunpack.c.h.b16 %v659_v22  ;;  %v600_v35 = vmul.f32 0.020408163, %v409_v30  ;;  %v1438_v38 = vsel %vm921_vm2, %v1437_v15, %v1433_v27 }
  0xdf   :  { %v2767_v40 = vsel %vm928_vm3, %v1442_v28, %v1438_v38  ;;  %495 = vadd.xlane.f32.xlu1 %v494_v24  ;;  %v148_v38 = vld [vmem:[%s3218_s0 + $0x390] sm:$0xff] }
  0xe0   :  { %v1163_v46 = vrot.slane %v829_v32, %v2691_v41  ;;  %v1168_v47 = vrot.slane %v830_v33, %v2694_v8  ;;  %v678_v48 = vpack.c.bf16 %v601_v34, %v600_v35  ;;  %492 = vadd.xlane.f32.xlu0 %v491_v31  ;;  %v184_v49 = vpop.xlane.xlu1 %183  ;;  %v512_v31 = vsel %vm154_vm0, %v153_v18, 0.0 }
  0xe1   :  { %v181_v51 = vpop.xlane.xlu0 %180  ;;  %v525_v58 = vmul.f32 0.020408163, %v184_v49  ;;  %v509_v32 = vsel %vm154_vm0, %v152_v20, 0.0 }
  0xe2   :  { %v1164_v45 = vsel %vm949_vm6, %v1163_v46, %v2670_v54  ;;  %v867_v53 = vunpack.c.l.b16 %v678_v48  ;;  %v868_v57 = vunpack.c.h.b16 %v678_v48  ;;  %v524_v62 = vmul.f32 0.020408163, %v181_v51  ;;  %v2074_v46 = vld [vmem:[%s3219_s1 + $0x10] sm:$0xff]  }
  0xe3   :  { %v2783_v59 = vsel %vm956_vm7, %v1168_v47, %v1164_v45  ;;  %507 = vadd.xlane.f32.xlu1 %v506_v52 }
  0xe4   :  { %v1349_v54 = vrot.slane %v867_v53, %v2586_v12  ;;  %v1354_v0 = vrot.slane %v868_v57, %v2589_v13  ;;  %v640_v4 = vpack.c.bf16 %v525_v58, %v524_v62  ;;  %504 = vadd.xlane.f32.xlu0 %v503_v25  ;;  %v244_v5 = vpop.xlane.xlu1 %243  ;;  %v500_v25 = vsel %vm154_vm0, %v149_v37, 0.0  ;;  %v2075_v62 = vld [vmem:[%s3219_s1 + $0x18] sm:$0xff]  }
  0xe5   :  { %v241_v7 = vpop.xlane.xlu0 %240  ;;  %v545_v16 = vmul.f32 0.020408163, %v244_v5 }
  0xe6   :  { %v1350_v14 = vsel %vm935_vm4, %v1349_v54, %v2688_v6  ;;  %v544_v17 = vmul.f32 0.020408163, %v241_v7  ;;  %v791_v22 = vunpack.c.l.b16 %v640_v4  ;;  %v792_v24 = vunpack.c.h.b16 %v640_v4  ;;  %v2073_v6 = vld [vmem:[%s3219_s1 + $0x8] sm:$0xff]  }
  0xe7   :  { %v2809_v21 = vsel %vm942_vm5, %v1354_v0, %v1350_v14  ;;  %441 = vadd.xlane.f32.xlu1 %v440_v9  ;;  %1608 = vmatpush1.bf16.msra.mxu0 %v2073_v6 }
  0xe8   :  { %v650_v27 = vpack.c.bf16 %v545_v16, %v544_v17  ;;  %v962_v15 = vrot.slane %v791_v22, %v2791_v1  ;;  %v969_v28 = vrot.slane %v792_v24, %v2795_v3  ;;  %438 = vadd.xlane.f32.xlu0 %v437_v10  ;;  %v358_v29 = vpop.xlane.xlu1 %357  ;;  %1609 = vmatprep.subr.bf16.mxu0 %v2124_v2  ;;  %v2076_v17 = vld [vmem:[%s3219_s1 + $0x20] sm:$0xff]  }
  0xe9   :  { %v355_v30 = vpop.xlane.xlu0 %354  ;;  %v583_v35 = vmul.f32 0.020408163, %v358_v29 }
  0xea   :  { %v811_v33 = vunpack.c.l.b16 %v650_v27  ;;  %v812_v34 = vunpack.c.h.b16 %v650_v27  ;;  %v582_v36 = vmul.f32 0.020408163, %v355_v30  ;;  %v964_v39 = vsel %vm963_vm8, %v962_v15, %v2717_v44  ;;  %v2077_v30 = vld [vmem:[%s3219_s1 + $0x28] sm:$0xff]  }
  0xeb   :  { %v2831_v47 = vsel %vm970_vm9, %v969_v28, %v964_v39  ;;  %513 = vadd.xlane.f32.xlu1 %v512_v31  ;;  %v497_v44 = vsel %vm154_vm0, %v148_v38, 0.0  ;;  %1610 = vmatpush1.bf16.msra.mxu0 %v2074_v46  ;;  %vm1012_vm0 = vcmask 1048512  }
  0xec   :  { %v1075_v48 = vrot.slane %v811_v33, %v2791_v1  ;;  %v1080_v49 = vrot.slane %v812_v34, %v2795_v3  ;;  %v669_v50 = vpack.c.bf16 %v583_v35, %v582_v36  ;;  %510 = vadd.xlane.f32.xlu0 %v509_v32  ;;  %v472_v51 = vpop.xlane.xlu1 %471  ;;  %1611 = vmatprep.subr.bf16.mxu0 %v2124_v2  ;;  %v972_v34 = vadd.s32 4294967216, %v2474_v23 }
  0xed   :  { %v469_v52 = vpop.xlane.xlu0 %468  ;;  %v621_v58 = vmul.f32 0.020408163, %v472_v51  ;;  %v979_v35 = vadd.s32 4294967208, %v2474_v23 }
  0xee   :  { %v1076_v45 = vsel %vm963_vm8, %v1075_v48, %v2731_v61  ;;  %v849_v53 = vunpack.c.l.b16 %v669_v50  ;;  %v850_v57 = vunpack.c.h.b16 %v669_v50  ;;  %v620_v11 = vmul.f32 0.020408163, %v469_v52 }
  0xef   :  { %v2841_v60 = vsel %vm970_vm9, %v1080_v49, %v1076_v45  ;;  %501 = vadd.xlane.f32.xlu1 %v500_v25  ;;  %1612 = vmatpush1.bf16.msra.mxu0 %v2075_v62  ;;  %v2078_v49 = vld [vmem:[%s3219_s1 + $0x30] sm:$0xff]   ;;  %v2884_v52 = vsub.s32 %v972_v34, %v2482_v26 }
  0xf0   :  { %v1261_v63 = vrot.slane %v849_v53, %v2691_v41  ;;  %v1266_v54 = vrot.slane %v850_v57, %v2694_v8  ;;  %v688_v0 = vpack.c.bf16 %v621_v58, %v620_v11  ;;  %498 = vadd.xlane.f32.xlu0 %v497_v44  ;;  %v304_v61 = vpop.xlane.xlu1 %303  ;;  %1613 = vmatprep.subr.bf16.mxu0 %v2124_v2 }
  0xf1   :  { %v301_v4 = vpop.xlane.xlu0 %300  ;;  %v565_v7 = vmul.f32 0.020408163, %v304_v61 }
  0xf2   :  { %v1262_v5 = vsel %vm949_vm6, %v1261_v63, %v2751_v19  ;;  %v564_v9 = vmul.f32 0.020408163, %v301_v4  ;;  %v887_v14 = vunpack.c.l.b16 %v688_v0  ;;  %v888_v16 = vunpack.c.h.b16 %v688_v0 }
  0xf3   :  { %v2852_v10 = vsel %vm956_vm7, %v1266_v54, %v1262_v5  ;;  %1614 = vmatpush1.bf16.msra.mxu0 %v2076_v17  ;;  %v2079_v54 = vld [vmem:[%s3219_s1 + $0x38] sm:$0xff]  }
  0xf4   :  { %v660_v18 = vpack.c.bf16 %v565_v7, %v564_v9  ;;  %v1447_v20 = vrot.slane %v887_v14, %v2586_v12  ;;  %v1452_v22 = vrot.slane %v888_v16, %v2589_v13  ;;  %v418_v24 = vpop.xlane.xlu1 %417  ;;  %1615 = vmatprep.subr.bf16.mxu0 %v2124_v2 }
  0xf5   :  { %v415_v19 = vpop.xlane.xlu0 %414  ;;  %v603_v15 = vmul.f32 0.020408163, %v418_v24 }
  0xf6   :  { %v831_v6 = vunpack.c.l.b16 %v660_v18  ;;  %v832_v27 = vunpack.c.h.b16 %v660_v18  ;;  %v602_v28 = vmul.f32 0.020408163, %v415_v19  ;;  %v1448_v29 = vsel %vm935_vm4, %v1447_v20, %v2767_v40  ;;  %v2080_v18 = vld [vmem:[%s3219_s1 + $0x40] sm:$0xff]  }
  0xf7   :  { %v2866_v12 = vsel %vm942_vm5, %v1452_v22, %v1448_v29  ;;  %1616 = vmatpush1.bf16.msra.mxu0 %v2077_v30  ;;  %vm1525_vm4 = vcmask 1042434   ;;  %vm1527_vm5 = vcmask 1043459  }
  0xf8   :  { %v1173_v13 = vrot.slane %v831_v6, %v2791_v1  ;;  %v1178_v31 = vrot.slane %v832_v27, %v2795_v3  ;;  %v679_v32 = vpack.c.bf16 %v603_v15, %v602_v28  ;;  %v190_v33 = vpop.xlane.xlu1 %189  ;;  %1617 = vmatprep.subr.bf16.mxu0 %v2124_v2 }
  0xf9   :  { %v187_v36 = vpop.xlane.xlu0 %186  ;;  %v527_v39 = vmul.f32 0.020408163, %v190_v33 }
  0xfa   :  { %v1174_v40 = vsel %vm963_vm8, %v1173_v13, %v2783_v59  ;;  %v869_v37 = vunpack.c.l.b16 %v679_v32  ;;  %v870_v38 = vunpack.c.h.b16 %v679_v32  ;;  %v526_v48 = vmul.f32 0.020408163, %v187_v36 }
  0xfb   :  { %v2876_v46 = vsel %vm970_vm9, %v1178_v31, %v1174_v40  ;;  %v2887_v59 = vsub.s32 %v979_v35, %v2482_v26  ;;  %1618 = vmatpush1.bf16.msra.mxu0 %v2078_v49  ;;  %v2081_v31 = vld [vmem:[%s3219_s1 + $0x48] sm:$0xff]   ;;  %v2082_v49 = vld [vmem:[%s3221_s3] sm:$0xff]  }
  0xfc   :  { %v1359_v50 = vrot.slane %v869_v37, %v2691_v41  ;;  %v1364_v51 = vrot.slane %v870_v38, %v2694_v8  ;;  %v641_v25 = vpack.c.bf16 %v527_v39, %v526_v48  ;;  %v250_v44 = vpop.xlane.xlu1 %249  ;;  %1619 = vmatprep.subr.bf16.mxu0 %v2124_v2 }
  0xfd   :  { %v247_v45 = vpop.xlane.xlu0 %246  ;;  %v547_v57 = vmul.f32 0.020408163, %v250_v44 }
  0xfe   :  { %v1360_v53 = vsel %vm949_vm6, %v1359_v50, %v2809_v21  ;;  %v546_v58 = vmul.f32 0.020408163, %v247_v45  ;;  %v793_v62 = vunpack.c.l.b16 %v641_v25  ;;  %v794_v63 = vunpack.c.h.b16 %v641_v25 }
  0xff   :  { %v2893_v11 = vsel %vm956_vm7, %v1364_v51, %v1360_v53  ;;  %1620 = vmatpush1.bf16.msra.mxu0 %v2079_v54  ;;  %v2125_v45 = vmov 0.0  }
 0x100   :  { %v651_v0 = vpack.c.bf16 %v547_v57, %v546_v58  ;;  %v976_v61 = vrot.slane %v793_v62, %v2884_v52  ;;  %v983_v21 = vrot.slane %v794_v63, %v2887_v59  ;;  %v364_v4 = vpop.xlane.xlu1 %363  ;;  %1621 = vmatprep.subr.bf16.mxu0 %v2124_v2  ;;  %2020 = vmatprep.subr.bf16.mxu1 %v2125_v45  ;;  %v2083_v62 = vld [vmem:[%s3221_s3 + $0x8] sm:$0xff]  }
 0x101   :  { %v361_v5 = vpop.xlane.xlu0 %360  ;;  %v585_v14 = vmul.f32 0.020408163, %v364_v4  ;;  %2021 = vmatpush3.bf16.msra.mxu1 %v2082_v49  ;;  %v993_v4 = vadd.s32 4294967192, %v2474_v23 }
 0x102   :  { %v813_v7 = vunpack.c.l.b16 %v651_v0  ;;  %v814_v9 = vunpack.c.h.b16 %v651_v0  ;;  %v584_v16 = vmul.f32 0.020408163, %v361_v5  ;;  %v978_v17 = vsel %vm977_vm10, %v976_v61, %v2831_v47  ;;  %2022 = vmatprep.subr.bf16.mxu1 %v2125_v45 }
 0x103   :  { %v2907_v20 = vsel %vm984_vm11, %v983_v21, %v978_v17  ;;  %1622 = vmatpush1.bf16.msra.mxu0 %v2080_v18  ;;  %v986_v21 = vadd.s32 4294967200, %v2474_v23 }
 0x104   :  { %v1085_v22 = vrot.slane %v813_v7, %v2884_v52  ;;  %v1090_v24 = vrot.slane %v814_v9, %v2887_v59  ;;  %v670_v19 = vpack.c.bf16 %v585_v14, %v584_v16  ;;  %v478_v6 = vpop.xlane.xlu1 %477  ;;  %1623 = vmatprep.subr.bf16.mxu0 %v2124_v2  ;;  %v2084_v16 = vld [vmem:[%s3221_s3 + $0x10] sm:$0xff]  }
 0x105   :  { %v475_v27 = vpop.xlane.xlu0 %474  ;;  %v623_v29 = vmul.f32 0.020408163, %v478_v6  ;;  %2023 = vmatpush3.bf16.msra.mxu1 %v2083_v62 }
 0x106   :  { %v1086_v15 = vsel %vm977_vm10, %v1085_v22, %v2841_v60  ;;  %v851_v28 = vunpack.c.l.b16 %v670_v19  ;;  %v852_v47 = vunpack.c.h.b16 %v670_v19  ;;  %v622_v13 = vmul.f32 0.020408163, %v475_v27  ;;  %2024 = vmatprep.subr.bf16.mxu1 %v2125_v45 }
 0x107   :  { %v2915_v30 = vsel %vm984_vm11, %v1090_v24, %v1086_v15  ;;  %1624 = vmatpush1.bf16.msra.mxu0 %v2081_v31  ;;  %v2962_v19 = vsub.s32 %v993_v4, %v2482_v26 }
 0x108   :  { %v1271_v32 = vrot.slane %v851_v28, %v2791_v1  ;;  %v1276_v33 = vrot.slane %v852_v47, %v2795_v3  ;;  %v689_v34 = vpack.c.bf16 %v623_v29, %v622_v13  ;;  %v310_v35 = vpop.xlane.xlu1 %309  ;;  %2052 = vmatprep.subr.bf16.mxu0 %v2125_v45  ;;  %v2085_v13 = vld [vmem:[%s3221_s3 + $0x18] sm:$0xff]  }
 0x109   :  { %v307_v60 = vpop.xlane.xlu0 %306  ;;  %v567_v2 = vmul.f32 0.020408163, %v310_v35  ;;  %2025 = vmatpush3.bf16.msra.mxu1 %v2084_v16 }
 0x10a   :  { %v1272_v36 = vsel %vm963_vm8, %v1271_v32, %v2852_v10  ;;  %v566_v40 = vmul.f32 0.020408163, %v307_v60  ;;  %v889_v38 = vunpack.c.l.b16 %v689_v34  ;;  %v890_v39 = vunpack.c.h.b16 %v689_v34  ;;  %2026 = vmatprep.subr.bf16.mxu1 %v2125_v45 }
 0x10b   :  { %v2925_v37 = vsel %vm970_vm9, %v1276_v33, %v1272_v36 }
 0x10c   :  { %v661_v48 = vpack.c.bf16 %v567_v2, %v566_v40  ;;  %v1457_v50 = vrot.slane %v889_v38, %v2691_v41  ;;  %v1462_v51 = vrot.slane %v890_v39, %v2694_v8  ;;  %v424_v25 = vpop.xlane.xlu1 %423 }
 0x10d   :  { %v421_v44 = vpop.xlane.xlu0 %420  ;;  %v605_v57 = vmul.f32 0.020408163, %v424_v25  ;;  %2027 = vmatpush3.bf16.msra.mxu1 %v2085_v13 }
 0x10e   :  { %v833_v10 = vunpack.c.l.b16 %v661_v48  ;;  %v834_v53 = vunpack.c.h.b16 %v661_v48  ;;  %v604_v58 = vmul.f32 0.020408163, %v421_v44  ;;  %v1458_v41 = vsel %vm949_vm6, %v1457_v50, %v2866_v12  ;;  %2028 = vmatprep.subr.bf16.mxu1 %v2125_v45 }
 0x10f   :  { %v2941_v8 = vsel %vm956_vm7, %v1462_v51, %v1458_v41  ;;  %vm1529_vm6 = vcmask 1044484   ;;  %vm1531_vm7 = vcmask 1045509  }
 0x110   :  { %v1183_v63 = vrot.slane %v833_v10, %v2884_v52  ;;  %v1188_v54 = vrot.slane %v834_v53, %v2887_v59  ;;  %v680_v0 = vpack.c.bf16 %v605_v57, %v604_v58  ;;  %v196_v61 = vpop.xlane.xlu1 %195 }
 0x111   :  { %v193_v5 = vpop.xlane.xlu0 %192  ;;  %v529_v14 = vmul.f32 0.020408163, %v196_v61 }
 0x112   :  { %v1184_v7 = vsel %vm977_vm10, %v1183_v63, %v2876_v46  ;;  %v871_v12 = vunpack.c.l.b16 %v680_v0  ;;  %v872_v9 = vunpack.c.h.b16 %v680_v0  ;;  %v528_v18 = vmul.f32 0.020408163, %v193_v5 }
 0x113   :  { %v2953_v17 = vsel %vm984_vm11, %v1188_v54, %v1184_v7  ;;  %v2959_v46 = vsub.s32 %v986_v21, %v2482_v26 }
 0x114   :  { %v1369_v22 = vrot.slane %v871_v12, %v2791_v1  ;;  %v1374_v24 = vrot.slane %v872_v9, %v2795_v3  ;;  %v642_v6 = vpack.c.bf16 %v529_v14, %v528_v18  ;;  %v208_v27 = vpop.xlane.xlu1 %207 }
 0x115   :  { %v205_v15 = vpop.xlane.xlu0 %204  ;;  %v533_v47 = vmul.f32 0.020408163, %v208_v27 }
 0x116   :  { %v1370_v28 = vsel %vm963_vm8, %v1369_v22, %v2893_v11  ;;  %v532_v29 = vmul.f32 0.020408163, %v205_v15  ;;  %v795_v32 = vunpack.c.l.b16 %v642_v6  ;;  %v796_v33 = vunpack.c.h.b16 %v642_v6 }
 0x117   :  { %v2970_v31 = vsel %vm970_vm9, %v1374_v24, %v1370_v28 }
 0x118   :  { %v644_v34 = vpack.c.bf16 %v533_v47, %v532_v29  ;;  %v990_v35 = vrot.slane %v795_v32, %v2959_v46  ;;  %v997_v11 = vrot.slane %v796_v33, %v2962_v19  ;;  %v256_v60 = vpop.xlane.xlu1 %255 }
 0x119   :  { %v253_v36 = vpop.xlane.xlu0 %252  ;;  %v549_v2 = vmul.f32 0.020408163, %v256_v60 }
 0x11a   :  { %v548_v40 = vmul.f32 0.020408163, %v253_v36  ;;  %v992_v38 = vsel %vm991_vm12, %v990_v35, %v2907_v20  ;;  %v799_v22 = vunpack.c.l.b16 %v644_v34  ;;  %v800_v24 = vunpack.c.h.b16 %v644_v34 }
 0x11b   :  { %v2979_v39 = vsel %vm998_vm13, %v997_v11, %v992_v38 }
 0x11c   :  { %v652_v48 = vpack.c.bf16 %v549_v2, %v548_v40  ;;  %v268_v49 = vpop.xlane.xlu1 %267  ;;  %v1017_v35 = vrot.slane %v799_v22, %v2497_v42  ;;  %v1021_v34 = vrot.slane %v800_v24, %v2500_v43 }
 0x11d   :  { %v265_v50 = vpop.xlane.xlu0 %264  ;;  %v553_v44 = vmul.f32 0.020408163, %v268_v49 }
 0x11e   :  { %v815_v51 = vunpack.c.l.b16 %v652_v48  ;;  %v816_v25 = vunpack.c.h.b16 %v652_v48  ;;  %v552_v10 = vmul.f32 0.020408163, %v265_v50 }
 0x120   :  { %v1095_v53 = vrot.slane %v815_v51, %v2959_v46  ;;  %v1100_v57 = vrot.slane %v816_v25, %v2962_v19  ;;  %v654_v58 = vpack.c.bf16 %v553_v44, %v552_v10  ;;  %v370_v62 = vpop.xlane.xlu1 %369  ;;  %v1022_v10 = vsel %vm914_vm1, %v1021_v34, %v1017_v35 }
 0x121   :  { %v367_v41 = vpop.xlane.xlu0 %366  ;;  %v587_v63 = vmul.f32 0.020408163, %v370_v62  ;;  %v1000_v35 = vadd.s32 4294967184, %v2474_v23 }
 0x122   :  { %v1096_v20 = vsel %vm991_vm12, %v1095_v53, %v2915_v30  ;;  %v586_v54 = vmul.f32 0.020408163, %v367_v41  ;;  %v819_v36 = vunpack.c.l.b16 %v654_v58 }
 0x123   :  { %v2986_v0 = vsel %vm998_vm13, %v1100_v57, %v1096_v20 }
 0x124   :  { %v671_v61 = vpack.c.bf16 %v587_v63, %v586_v54  ;;  %v484_v21 = vpop.xlane.xlu1 %483  ;;  %v1115_v53 = vrot.slane %v819_v36, %v2497_v42  ;;  %v1007_v36 = vadd.s32 4294967176, %v2474_v23 }
 0x125   :  { %v481_v4 = vpop.xlane.xlu0 %480  ;;  %v625_v12 = vmul.f32 0.020408163, %v484_v21 }
 0x126   :  { %v853_v5 = vunpack.c.l.b16 %v671_v61  ;;  %v854_v7 = vunpack.c.h.b16 %v671_v61  ;;  %v624_v9 = vmul.f32 0.020408163, %v481_v4 }
 0x128   :  { %v1281_v14 = vrot.slane %v853_v5, %v2884_v52  ;;  %v1286_v16 = vrot.slane %v854_v7, %v2887_v59  ;;  %v690_v18 = vpack.c.bf16 %v625_v12, %v624_v9  ;;  %v214_v30 = vpop.xlane.xlu1 %213 }
 0x129   :  { %v535_v28 = vmul.f32 0.020408163, %v214_v30  ;;  %v211_v47 = vpop.xlane.xlu0 %210 }
 0x12a   :  { %v1282_v6 = vsel %vm977_vm10, %v1281_v14, %v2925_v37  ;;  %v891_v27 = vunpack.c.l.b16 %v690_v18  ;;  %v892_v15 = vunpack.c.h.b16 %v690_v18  ;;  %v534_v13 = vmul.f32 0.020408163, %v211_v47 }
 0x12b   :  { %v2993_v29 = vsel %vm984_vm11, %v1286_v16, %v1282_v6  ;;  %v820_v37 = vunpack.c.h.b16 %v654_v58 }
 0x12c   :  { %v1467_v32 = vrot.slane %v891_v27, %v2791_v1  ;;  %v1472_v33 = vrot.slane %v892_v15, %v2795_v3  ;;  %v645_v11 = vpack.c.bf16 %v535_v28, %v534_v13  ;;  %v274_v60 = vpop.xlane.xlu1 %273 }
 0x12d   :  { %v555_v40 = vmul.f32 0.020408163, %v274_v60  ;;  %v271_v38 = vpop.xlane.xlu0 %270 }
 0x12e   :  { %v1468_v2 = vsel %vm963_vm8, %v1467_v32, %v2941_v8  ;;  %v801_v49 = vunpack.c.l.b16 %v645_v11  ;;  %v802_v1 = vunpack.c.h.b16 %v645_v11  ;;  %v554_v50 = vmul.f32 0.020408163, %v271_v38 }
 0x12f   :  { %v3002_v48 = vsel %vm970_vm9, %v1472_v33, %v1468_v2  ;;  %v1119_v8 = vrot.slane %v820_v37, %v2500_v43  ;;  %v3031_v37 = vsub.s32 %v1000_v35, %v2482_v26  ;;  %vm1947_vm8 = vcmask 160768  }
 0x130   :  { %v1026_v3 = vrot.slane %v801_v49, %v2511_v55  ;;  %v1031_v51 = vrot.slane %v802_v1, %v2514_v56  ;;  %v655_v25 = vpack.c.bf16 %v555_v40, %v554_v50  ;;  %v316_v44 = vpop.xlane.xlu1 %315  ;;  %v3034_v50 = vsub.s32 %v1007_v36, %v2482_v26 }
 0x131   :  { %v569_v57 = vmul.f32 0.020408163, %v316_v44  ;;  %v313_v58 = vpop.xlane.xlu0 %312  ;;  %v1120_v7 = vsel %vm914_vm1, %v1119_v8, %v1115_v53 }
 0x132   :  { %v1027_v62 = vsel %vm921_vm2, %v1026_v3, %v1022_v10  ;;  %v821_v41 = vunpack.c.l.b16 %v655_v25  ;;  %v822_v20 = vunpack.c.h.b16 %v655_v25  ;;  %v568_v63 = vmul.f32 0.020408163, %v313_v58 }
 0x133   :  { %v1032_v54 = vsel %vm928_vm3, %v1031_v51, %v1027_v62 }
 0x134   :  { %v1124_v61 = vrot.slane %v821_v41, %v2511_v55  ;;  %v1129_v21 = vrot.slane %v822_v20, %v2514_v56  ;;  %v662_v4 = vpack.c.bf16 %v569_v57, %v568_v63  ;;  %v328_v5 = vpop.xlane.xlu1 %327 }
 0x135   :  { %v573_v12 = vmul.f32 0.020408163, %v328_v5  ;;  %v325_v9 = vpop.xlane.xlu0 %324 }
 0x136   :  { %v1125_v14 = vsel %vm921_vm2, %v1124_v61, %v1120_v7  ;;  %v835_v16 = vunpack.c.l.b16 %v662_v4  ;;  %v836_v18 = vunpack.c.h.b16 %v662_v4  ;;  %v572_v22 = vmul.f32 0.020408163, %v325_v9 }
 0x137   :  { %v1130_v24 = vsel %vm928_vm3, %v1129_v21, %v1125_v14 }
 0x138   :  { %v1193_v30 = vrot.slane %v835_v16, %v2959_v46  ;;  %v1198_v6 = vrot.slane %v836_v18, %v2962_v19  ;;  %v664_v27 = vpack.c.bf16 %v573_v12, %v572_v22  ;;  %v3018_v15 = vpop.xlane.xlu1 %429  ;;  %v1533_v28 = vsel %vm1523_vm14, %v1130_v24, %v1032_v54 }
 0x139   :  { %v3021_v47 = vpop.xlane.xlu0 %426 }
 0x13a   :  { %v1194_v13 = vsel %vm991_vm12, %v1193_v30, %v2953_v17  ;;  %v839_v10 = vunpack.c.l.b16 %v664_v27  ;;  %v840_v53 = vunpack.c.h.b16 %v664_v27 }
 0x13b   :  { %v3026_v32 = vsel %vm998_vm13, %v1198_v6, %v1194_v13 }
 0x13c   :  { %v202_v33 = vpop.xlane.xlu1 %201  ;;  %v1213_v21 = vrot.slane %v839_v10, %v2497_v42  ;;  %v1217_v4 = vrot.slane %v840_v53, %v2500_v43 }
 0x13d   :  { %v531_v34 = vmul.f32 0.020408163, %v202_v33  ;;  %v199_v11 = vpop.xlane.xlu0 %198 }
 0x13e   :  { %v530_v60 = vmul.f32 0.020408163, %v199_v11  ;;  %v1218_v30 = vsel %vm914_vm1, %v1217_v4, %v1213_v21 }
 0x140   :  { %v643_v2 = vpack.c.bf16 %v531_v34, %v530_v60  ;;  %v262_v40 = vpop.xlane.xlu1 %261 }
 0x141   :  { %v551_v38 = vmul.f32 0.020408163, %v262_v40  ;;  %v259_v49 = vpop.xlane.xlu0 %258 }
 0x142   :  { %v797_v1 = vunpack.c.l.b16 %v643_v2  ;;  %v550_v17 = vmul.f32 0.020408163, %v259_v49  ;;  %v798_v3 = vunpack.c.h.b16 %v643_v2 }
 0x144   :  { %v1004_v51 = vrot.slane %v797_v1, %v3031_v37  ;;  %v653_v25 = vpack.c.bf16 %v551_v38, %v550_v17  ;;  %v334_v44 = vpop.xlane.xlu1 %333  ;;  %v1011_v41 = vrot.slane %v798_v3, %v3034_v50 }
 0x145   :  { %v575_v23 = vmul.f32 0.020408163, %v334_v44  ;;  %v331_v8 = vpop.xlane.xlu0 %330 }
 0x146   :  { %v817_v57 = vunpack.c.l.b16 %v653_v25  ;;  %v818_v58 = vunpack.c.h.b16 %v653_v25  ;;  %v574_v62 = vmul.f32 0.020408163, %v331_v8  ;;  %v1006_v26 = vsel %vm1005_vm15, %v1004_v51, %v2979_v39 }
 0x147   :  { %v1013_v14 = vsel %vm1012_vm0, %v1011_v41, %v1006_v26  ;;  %v607_v51 = vmul.f32 0.020408163, %v3018_v15  ;;  %v606_v25 = vmul.f32 0.020408163, %v3021_v47 }
 0x148   :  { %v1105_v20 = vrot.slane %v817_v57, %v3031_v37  ;;  %v1110_v63 = vrot.slane %v818_v58, %v3034_v50  ;;  %v665_v54 = vpack.c.bf16 %v575_v23, %v574_v62  ;;  %v376_v61 = vpop.xlane.xlu1 %375 }
 0x149   :  { %v373_v5 = vpop.xlane.xlu0 %372  ;;  %v589_v38 = vmul.f32 0.020408163, %v376_v61  ;;  %v681_v58 = vpack.c.bf16 %v607_v51, %v606_v25 }
 0x14a   :  { %v1106_v7 = vsel %vm1005_vm15, %v1105_v20, %v2986_v0  ;;  %v841_v12 = vunpack.c.l.b16 %v665_v54  ;;  %v842_v9 = vunpack.c.h.b16 %v665_v54  ;;  %v588_v49 = vmul.f32 0.020408163, %v373_v5 }
 0x14b   :  { %v1111_v39 = vsel %vm1012_vm0, %v1110_v63, %v1106_v7  ;;  %v873_v63 = vunpack.c.l.b16 %v681_v58 }
 0x14c   :  { %v1222_v16 = vrot.slane %v841_v12, %v2511_v55  ;;  %v1227_v18 = vrot.slane %v842_v9, %v2514_v56  ;;  %v388_v22 = vpop.xlane.xlu1 %387  ;;  %v1524_v24 = vsel %vm1523_vm14, %v1111_v39, %v1013_v14  ;;  %v672_v53 = vpack.c.bf16 %v589_v38, %v588_v49 }
 0x14d   :  { %v385_v6 = vpop.xlane.xlu0 %384  ;;  %v593_v20 = vmul.f32 0.020408163, %v388_v22  ;;  %v1379_v22 = vrot.slane %v873_v63, %v2884_v52 }
 0x14e   :  { %v1223_v27 = vsel %vm921_vm2, %v1222_v16, %v1218_v30  ;;  %v855_v26 = vunpack.c.l.b16 %v672_v53  ;;  %v592_v47 = vmul.f32 0.020408163, %v385_v6  ;;  %v856_v61 = vunpack.c.h.b16 %v672_v53 }
 0x14f   :  { %v1228_v0 = vsel %vm928_vm3, %v1227_v18, %v1223_v27  ;;  %v874_v27 = vunpack.c.h.b16 %v681_v58 }
 0x150   :  { %v490_v13 = vpop.xlane.xlu1 %489  ;;  %v3055_v33 = vsel %vm1525_vm4, %v1228_v0, %v1533_v28  ;;  %v1291_v21 = vrot.slane %v855_v26, %v2959_v46  ;;  %v674_v12 = vpack.c.bf16 %v593_v20, %v592_v47  ;;  %v1296_v0 = vrot.slane %v856_v61, %v2962_v19 }
 0x151   :  { %v487_v35 = vpop.xlane.xlu0 %486  ;;  %v627_v4 = vmul.f32 0.020408163, %v490_v13 }
 0x152   :  { %v626_v39 = vmul.f32 0.020408163, %v487_v35  ;;  %v1292_v6 = vsel %vm991_vm12, %v1291_v21, %v2993_v29  ;;  %v860_v25 = vunpack.c.h.b16 %v674_v12 }
 0x153   :  { %v1297_v29 = vsel %vm998_vm13, %v1296_v0, %v1292_v6 }
 0x154   :  { %v322_v34 = vpop.xlane.xlu1 %321  ;;  %v1315_v63 = vrot.slane %v860_v25, %v2500_v43 }
 0x155   :  { %v571_v11 = vmul.f32 0.020408163, %v322_v34  ;;  %v319_v60 = vpop.xlane.xlu0 %318  ;;  %v859_v34 = vunpack.c.l.b16 %v674_v12 }
 0x156   :  { %v570_v36 = vmul.f32 0.020408163, %v319_v60 }
 0x158   :  { %v663_v2 = vpack.c.bf16 %v571_v11, %v570_v36  ;;  %v394_v40 = vpop.xlane.xlu1 %393 }
 0x159   :  { %v391_v1 = vpop.xlane.xlu0 %390 }
 0x15a   :  { %v837_v17 = vunpack.c.l.b16 %v663_v2  ;;  %v838_v3 = vunpack.c.h.b16 %v663_v2  ;;  %v594_v9 = vmul.f32 0.020408163, %v391_v1  ;;  %v691_v2 = vpack.c.bf16 %v627_v4, %v626_v39 }
 0x15c   :  { %v1203_v44 = vrot.slane %v837_v17, %v3031_v37  ;;  %v1208_v28 = vrot.slane %v838_v3, %v3034_v50  ;;  %v436_v10 = vpop.xlane.xlu1 %435 }
 0x15d   :  { %v433_v23 = vpop.xlane.xlu0 %432  ;;  %v609_v16 = vmul.f32 0.020408163, %v436_v10 }
 0x15e   :  { %v1204_v8 = vsel %vm1005_vm15, %v1203_v44, %v3026_v32  ;;  %v595_v32 = vmul.f32 0.020408163, %v394_v40  ;;  %v608_v18 = vmul.f32 0.020408163, %v433_v23  ;;  %v1380_v23 = vsel %vm977_vm10, %v1379_v22, %v2970_v31 }
 0x15f   :  { %v1209_v57 = vsel %vm1012_vm0, %v1208_v28, %v1204_v8  ;;  %v1384_v28 = vrot.slane %v874_v27, %v2887_v59  ;;  %v1311_v8 = vrot.slane %v859_v34, %v2497_v42 }
 0x160   :  { %v448_v62 = vpop.xlane.xlu1 %447  ;;  %v1526_v41 = vsel %vm1525_vm4, %v1209_v57, %v1524_v24  ;;  %v675_v11 = vpack.c.bf16 %v595_v32, %v594_v9  ;;  %v682_v40 = vpack.c.bf16 %v609_v16, %v608_v18 }
 0x161   :  { %v445_v15 = vpop.xlane.xlu0 %444  ;;  %v613_v35 = vmul.f32 0.020408163, %v448_v62  ;;  %v893_v62 = vunpack.c.l.b16 %v691_v2  ;;  %v1385_v39 = vsel %vm984_vm11, %v1384_v28, %v1380_v23 }
 0x162   :  { %v612_v38 = vmul.f32 0.020408163, %v445_v15  ;;  %v861_v10 = vunpack.c.l.b16 %v675_v11  ;;  %v875_v26 = vunpack.c.l.b16 %v682_v40  ;;  %v862_v31 = vunpack.c.h.b16 %v675_v11 }
 0x163   :  { %v876_v32 = vunpack.c.h.b16 %v682_v40  ;;  %v1477_v16 = vrot.slane %v893_v62, %v2884_v52 }
 0x164   :  { %v382_v54 = vpop.xlane.xlu1 %381  ;;  %v684_v57 = vpack.c.bf16 %v613_v35, %v612_v38  ;;  %v1325_v34 = vrot.slane %v862_v31, %v2514_v56 }
 0x165   :  { %v591_v5 = vmul.f32 0.020408163, %v382_v54  ;;  %v379_v7 = vpop.xlane.xlu0 %378  ;;  %v1478_v35 = vsel %vm977_vm10, %v1477_v16, %v3002_v48 }
 0x166   :  { %v590_v14 = vmul.f32 0.020408163, %v379_v7  ;;  %v1320_v7 = vrot.slane %v861_v10, %v2511_v55  ;;  %v879_v9 = vunpack.c.l.b16 %v684_v57 }
 0x168   :  { %v673_v24 = vpack.c.bf16 %v591_v5, %v590_v14  ;;  %v454_v30 = vpop.xlane.xlu1 %453  ;;  %v894_v5 = vunpack.c.h.b16 %v691_v2  ;;  %v880_v14 = vunpack.c.h.b16 %v684_v57  ;;  %v1409_v52 = vrot.slane %v879_v9, %v2497_v42 }
 0x169   :  { %v451_v13 = vpop.xlane.xlu0 %450  ;;  %v615_v17 = vmul.f32 0.020408163, %v454_v30  ;;  %v1316_v30 = vsel %vm914_vm1, %v1315_v63, %v1311_v8 }
 0x16a   :  { %v857_v60 = vunpack.c.l.b16 %v673_v24  ;;  %v858_v36 = vunpack.c.h.b16 %v673_v24  ;;  %v614_v3 = vmul.f32 0.020408163, %v451_v13  ;;  %v1482_v13 = vrot.slane %v894_v5, %v2887_v59 }
 0x16b   :  { %v1413_v2 = vrot.slane %v880_v14, %v2500_v43 }
 0x16c   :  { %v1301_v49 = vrot.slane %v857_v60, %v3031_v37  ;;  %v1306_v1 = vrot.slane %v858_v36, %v3034_v50  ;;  %v496_v51 = vpop.xlane.xlu1 %495  ;;  %v685_v15 = vpack.c.bf16 %v615_v17, %v614_v3  ;;  %v1321_v60 = vsel %vm921_vm2, %v1320_v7, %v1316_v30 }
 0x16d   :  { %v493_v44 = vpop.xlane.xlu0 %492  ;;  %v629_v54 = vmul.f32 0.020408163, %v496_v51  ;;  %v1394_v36 = vrot.slane %v876_v32, %v2962_v19  ;;  %v1414_v57 = vsel %vm914_vm1, %v1413_v2, %v1409_v52 }
 0x16e   :  { %v1302_v53 = vsel %vm1005_vm15, %v1301_v49, %v1297_v29  ;;  %v628_v61 = vmul.f32 0.020408163, %v493_v44  ;;  %v881_v18 = vunpack.c.l.b16 %v685_v15  ;;  %v882_v40 = vunpack.c.h.b16 %v685_v15 }
 0x16f   :  { %v1307_v58 = vsel %vm1012_vm0, %v1306_v1, %v1302_v53  ;;  %v1326_v53 = vsel %vm928_vm3, %v1325_v34, %v1321_v60 }
 0x170   :  { %v508_v20 = vpop.xlane.xlu1 %507  ;;  %v3080_v47 = vsel %vm1527_vm5, %v1307_v58, %v1526_v41  ;;  %v1389_v41 = vrot.slane %v875_v26, %v2959_v46  ;;  %v692_v27 = vpack.c.bf16 %v629_v54, %v628_v61  ;;  %v1418_v49 = vrot.slane %v881_v18, %v2511_v55 }
 0x171   :  { %v633_v21 = vmul.f32 0.020408163, %v508_v20  ;;  %v505_v4 = vpop.xlane.xlu0 %504  ;;  %v1423_v48 = vrot.slane %v882_v40, %v2514_v56  ;;  %v1535_v18 = vsel %vm1527_vm5, %v1326_v53, %v3055_v33  ;;  %v2097_v53 = vld [vmem:[%s3225_s7 + $0x18] sm:$0xff]  }
 0x172   :  { %v632_v12 = vmul.f32 0.020408163, %v505_v4  ;;  %v1390_v38 = vsel %vm991_vm12, %v1389_v41, %v1385_v39  ;;  %v895_v17 = vunpack.c.l.b16 %v692_v27  ;;  %v896_v8 = vunpack.c.h.b16 %v692_v27 }
 0x173   :  { %v1395_v23 = vsel %vm998_vm13, %v1394_v36, %v1390_v38  ;;  %v1419_v20 = vsel %vm921_vm2, %v1418_v49, %v1414_v57  ;;  %v1483_v39 = vsel %vm984_vm11, %v1482_v13, %v1478_v35  ;;  %v1963_v36 = vld [vmem:[%s3220_s2] ss:$0 sm:$0xff] }
 0x174   :  { %v442_v24 = vpop.xlane.xlu1 %441  ;;  %v694_v22 = vpack.c.bf16 %v633_v21, %v632_v12  ;;  %v1487_v63 = vrot.slane %v895_v17, %v2959_v46  ;;  %v1424_v32 = vsel %vm928_vm3, %v1423_v48, %v1419_v20  ;;  %v1492_v16 = vrot.slane %v896_v8, %v2962_v19  ;;  %v2089_v17 = vld [vmem:[%s3223_s5 + $0x8] sm:$0xff]   ;;  %v2098_v20 = vld [vmem:[%s3225_s7 + $0x20] sm:$0xff]  }
 0x175   :  { %v611_v6 = vmul.f32 0.020408163, %v442_v24  ;;  %v439_v0 = vpop.xlane.xlu0 %438 }
 0x176   :  { %v610_v11 = vmul.f32 0.020408163, %v439_v0  ;;  %v899_v3 = vunpack.c.l.b16 %v694_v22  ;;  %v900_v51 = vunpack.c.h.b16 %v694_v22  ;;  %v1488_v24 = vsel %vm991_vm12, %v1487_v63, %v1483_v39  ;;  %v2099_v63 = vld [vmem:[%s3225_s7 + $0x28] sm:$0xff]  }
 0x177   :  { %v1536_v22 = vsel %vm1529_vm6, %v1424_v32, %v1535_v18  ;;  %v1493_v33 = vsel %vm998_vm13, %v1492_v16, %v1488_v24 }
 0x178   :  { %v683_v59 = vpack.c.bf16 %v611_v6, %v610_v11  ;;  %v514_v1 = vpop.xlane.xlu1 %513  ;;  %v1507_v54 = vrot.slane %v899_v3, %v2497_v42  ;;  %v1511_v61 = vrot.slane %v900_v51, %v2500_v43  ;;  %v2090_v3 = vld [vmem:[%s3223_s5 + $0x10] sm:$0xff]   ;;  %v2091_v51 = vld [vmem:[%s3223_s5 + $0x18] sm:$0xff]  }
 0x179   :  { %v635_v29 = vmul.f32 0.020408163, %v514_v1  ;;  %v511_v25 = vpop.xlane.xlu0 %510 }
 0x17a   :  { %v877_v44 = vunpack.c.l.b16 %v683_v59  ;;  %v878_v28 = vunpack.c.h.b16 %v683_v59  ;;  %v634_v10 = vmul.f32 0.020408163, %v511_v25  ;;  %v1512_v41 = vsel %vm914_vm1, %v1511_v61, %v1507_v54  ;;  %v2088_v59 = vld [vmem:[%s3223_s5] sm:$0xff]   ;;  %v2093_v25 = vld [vmem:[%s3223_s5 + $0x28] sm:$0xff]  }
 0x17b   :  { %vm1601_vm1 = vcmask 261120   ;;  %v1983_v54 = vld [vmem:[%s3224_s6] ss:$0 sm:$0xff] }
 0x17c   :  { %v1399_v58 = vrot.slane %v877_v44, %v3031_v37  ;;  %v1404_v62 = vrot.slane %v878_v28, %v3034_v50  ;;  %v695_v26 = vpack.c.bf16 %v635_v29, %v634_v10  ;;  %v502_v15 = vpop.xlane.xlu1 %501  ;;  %v2092_v29 = vld [vmem:[%s3223_s5 + $0x20] sm:$0xff]   ;;  %v2095_v28 = vld [vmem:[%s3225_s7 + $0x8] sm:$0xff]   ;;  %v2096_v10 = vld [vmem:[%s3225_s7 + $0x10] sm:$0xff]  }
 0x17d   :  { %v631_v21 = vmul.f32 0.020408163, %v502_v15  ;;  %v499_v4 = vpop.xlane.xlu0 %498  ;;  %v2094_v44 = vld [vmem:[%s3225_s7] sm:$0xff]   ;;  %s2127_s7 = smov [#allocation2]  }
 0x17e   :  { %v901_v5 = vunpack.c.l.b16 %v695_v26  ;;  %v902_v31 = vunpack.c.h.b16 %v695_v26  ;;  %v630_v7 = vmul.f32 0.020408163, %v499_v4  ;;  %v1400_v12 = vsel %vm1005_vm15, %v1399_v58, %v1395_v23  ;;  %v1975_v23 = vld [vmem:[%s3222_s4] ss:$0 sm:$0xff]  ;;  %s1955_s30 = sshll.u32 %s2127_s7, 4  ;;  %s1956_s30 = int_to_ptr.vmem [resolvable:$true] %s1955_s30 }
 0x17f   :  { %v1405_v9 = vsel %vm1012_vm0, %v1404_v62, %v1400_v12  ;;  %s2100_s6 = scalar_lea.vmem %s1956_s30, 128  ;;  %p2105_p1 = scmp.lt.s32.totalorder %s1956_s30, %s1956_s30 }
 0x180   :  { %v1516_v14 = vrot.slane %v901_v5, %v2511_v55  ;;  %v1521_v46 = vrot.slane %v902_v31, %v2514_v56  ;;  %v693_v42 = vpack.c.bf16 %v631_v21, %v630_v7  ;;  %v1530_v43 = vsel %vm1529_vm6, %v1405_v9, %v3080_v47  ;;  %p2101_p0 = scmp.ne.s32.totalorder %s1956_s30, %s2100_s6  ;;  %p2106_p2 = scmp.lt.s32.totalorder %s2100_s6, %s2100_s6 }
 0x182   :  { %v897_v30 = vunpack.c.l.b16 %v693_v42  ;;  %v898_v27 = vunpack.c.h.b16 %v693_v42  ;;  %v1517_v55 = vsel %vm921_vm2, %v1516_v14, %v1512_v41  ;;  %vm2126_vm2 = vmmov 0   ;;  %p2107_p3 = por %p2106_p2, %p2105_p1 }
 0x183   :  { %v1522_v56 = vsel %vm928_vm3, %v1521_v46, %v1517_v55  ;;  %2032 = vmatprep.mubr.msk.bf16.mxu1 %vm2126_vm2, %v2125_v45  ;;  %vm1702_vm3 = vcmask 785408  }
 0x184   :  { %v1497_v47 = vrot.slane %v897_v30, %v3031_v37  ;;  %v1502_v6 = vrot.slane %v898_v27, %v3034_v50  ;;  %v1537_v19 = vsel %vm1531_vm7, %v1522_v56, %v1536_v22  ;;  %v2086_v37 = vld [vmem:[%s3221_s3 + $0x20] sm:$0xff]   ;;  %v2087_v50 = vld [vmem:[%s3221_s3 + $0x28] sm:$0xff]   ;;  %p2108_p4 = pnand %p2107_p3, %p2101_p0 }
 0x185   :  { %v1539_v0 = vpack.c.b16 %v1537_v19, %v1537_v19  ;;  %2029 = vmatpush3.bf16.msra.mxu1 %v2086_v37 }
 0x186   :  { %v1498_v13 = vsel %vm1005_vm15, %v1497_v47, %v1493_v33  ;;  %2030 = vmatprep.subr.bf16.mxu1 %v2125_v45 }
 0x187   :  { %1974 = vmatprep.mubr.msk.bf16.mxu0 %vm1601_vm1, %v1539_v0  ;;  %v1503_v34 = vsel %vm1012_vm0, %v1502_v6, %v1498_v13 }
 0x188   :  { %v1532_v11 = vsel %vm1531_vm7, %v1503_v34, %v1530_v43 }
 0x189   :  { %v1538_v60 = vpack.c.b16 %v1532_v11, %v1532_v11  ;;  %2031 = vmatpush3.bf16.msra.mxu1 %v2087_v50 }
 0x18a   :  { %2036 = vmatprep.subr.bf16.mxu1 %v2125_v45 }
 0x18b   :  { %1638 = vmatmul.mubr.bf16.vlgmr.msra.gmra.mrb[0].mxu0 %v1538_v60 }
 0x18c   :  { %2064 = vmatprep.mubr.msk.bf16.mxu0 %vm2126_vm2, %v2125_v45  ;;  %2053 = vmatpush3.bf16.msra.mxu0 %v2094_v44 }
 0x18d   :  { %2054 = vmatprep.subr.bf16.mxu0 %v2125_v45 }
 0x190   :  { %2055 = vmatpush3.bf16.msra.mxu0 %v2095_v28 }
 0x191   :  { %2056 = vmatprep.subr.bf16.mxu0 %v2125_v45 }
 0x194   :  { %2057 = vmatpush3.bf16.msra.mxu0 %v2096_v10 }
 0x195   :  { %2058 = vmatprep.subr.bf16.mxu0 %v2125_v45 }
 0x198   :  { %2059 = vmatpush3.bf16.msra.mxu0 %v2097_v53 }
 0x199   :  { %2060 = vmatprep.subr.bf16.mxu0 %v2125_v45 }
 0x19c   :  { %2061 = vmatpush3.bf16.msra.mxu0 %v2098_v20 }
 0x19d   :  { %2062 = vmatprep.subr.bf16.mxu0 %v2125_v45 }
 0x1a0   :  { %2063 = vmatpush3.bf16.msra.mxu0 %v2099_v63 }
 0x25e   :  { %v1639_v52 = vpop.f32.mrb[0].mxu0 }
 0x25f   :  { %v1640_v2 = vadd.f32 %v1963_v36, %v1639_v52  ;;  %v1641_v40 = vpop.f32.mrb[1].mxu0 }
 0x260   :  { %v1642_v35 = vpop.f32.mrb[2].mxu0 }
 0x261   :  { %v1645_v38 = vmax.f32 %v1640_v2, 0.0  ;;  %v1643_v49 = vpop.f32.mrb[3].mxu0 }
 0x263   :  { %v1646_v1 = vpack.c.bf16 %v1645_v38, %v1645_v38 }
 0x265   :  { %2033 = vmatmul.mubr.msk.bf16.vlgmr.msra.gmra.mrb[0].mxu1 %vm1702_vm3, %v1646_v1 }
 0x266   :  { %2037 = vmatpush3.bf16.msra.mxu1 %v2088_v59  ;;  %2048 = vmatprep.mubr.msk.bf16.mxu1 %vm2126_vm2, %v2125_v45 }
 0x267   :  { %2038 = vmatprep.subr.bf16.mxu1 %v2125_v45 }
 0x26a   :  { %2039 = vmatpush3.bf16.msra.mxu1 %v2089_v17 }
 0x26b   :  { %2040 = vmatprep.subr.bf16.mxu1 %v2125_v45 }
 0x26e   :  { %2041 = vmatpush3.bf16.msra.mxu1 %v2090_v3 }
 0x26f   :  { %2042 = vmatprep.subr.bf16.mxu1 %v2125_v45 }
 0x272   :  { %2043 = vmatpush3.bf16.msra.mxu1 %v2091_v51 }
 0x273   :  { %2044 = vmatprep.subr.bf16.mxu1 %v2125_v45 }
 0x276   :  { %2045 = vmatpush3.bf16.msra.mxu1 %v2092_v29 }
 0x277   :  { %2046 = vmatprep.subr.bf16.mxu1 %v2125_v45  ;;  %v1991_v45 = vld [vmem:[%s3226_s8] ss:$0 sm:$0xff] }
 0x27a   :  { %2047 = vmatpush3.bf16.msra.mxu1 %v2093_v25 }
 0x338   :  { %v1740_v48 = vpop.f32.mrb[0].mxu1 }
 0x339   :  { %v1741_v8 = vadd.f32 %v1975_v23, %v1740_v48  ;;  %v2034_v57 = vpop.f32.mrb[1].mxu1 }
 0x33a   :  { %v1743_v58 = vpop.f32.mrb[2].mxu1 }
 0x33b   :  { %v1746_v62 = vmax.f32 %v1741_v8, 0.0  ;;  %v2035_v26 = vpop.f32.mrb[3].mxu1 }
 0x33d   :  { %v1747_v15 = vpack.c.bf16 %v1746_v62, %v1746_v62 }
 0x33f   :  { %2049 = vmatmul.mubr.msk.bf16.vlgmr.msra.gmra.mrb[4].mxu1 %vm1702_vm3, %v1747_v15 }
 0x412   :  { %v1840_v61 = vpop.f32.mrb[4].mxu1 }
 0x413   :  { %v1841_v21 = vadd.f32 %v1983_v54, %v1840_v61  ;;  %v2050_v4 = vpop.f32.mrb[5].mxu1 }
 0x414   :  { %v1843_v5 = vpop.f32.mrb[6].mxu1 }
 0x415   :  { %v1846_v31 = vmax.f32 %v1841_v21, 0.0  ;;  %v2051_v7 = vpop.f32.mrb[7].mxu1 }
 0x417   :  { %v1847_v12 = vpack.c.bf16 %v1846_v31, %v1846_v31 }
 0x419   :  { %2065 = vmatmul.mubr.msk.bf16.vlgmr.msra.gmra.mrb[4].mxu0 %vm1702_vm3, %v1847_v12 }
 0x4ec   :  { %v1940_v32 = vpop.f32.mrb[4].mxu0 }
 0x4ed   :  { %v1941_v9 = vadd.f32 %v1991_v45, %v1940_v32  ;;  %v2066_v14 = vpop.f32.mrb[5].mxu0 }
 0x4ee   :  { %v1943_v46 = vpop.f32.mrb[6].mxu0 }
 0x4ef   :  { %v1946_v42 = vmax.f32 %v1941_v9, 0.0  ;;  %v2067_v43 = vpop.f32.mrb[7].mxu0 }
 0x4f1   :  { %1948 = vst.msk [vmem:[#allocation2] sm:$0x3f] %vm1947_vm8, %v1946_v42 }
 0x4f2   :  { %2111 = shalt.err (!%p2108_p4)
}
 0x4f3   :  { %s2112_s10 = scalar_lea.hbm %s3227_s9, 128 }
 0x4f4   :  { %p2113_p5 = scmp.ne.s32.totalorder %s3227_s9, %s2112_s10  ;;  %p2116_p6 = scmp.lt.u32.totalorder %s2112_s10, %s3227_s9 }
 0x4f6   :  { %p2118_p7 = pnand %p2116_p6, %p2113_p5 }
 0x4f8   :  { %2121 = shalt.err (!%p2118_p7)
}
 0x4f9   :  { %1958 = dma.vmem_to_hbm [thread:$0]  %s1956_s30, 128, %s3227_s9, [#allocation3]  }
 0x4fa   :  { %2122 = dma.done.wait [#allocation3], 128  }
 0x4fb   :  { %2123 = vsyncadd [#allocation3], 4294967168 }
 0x4fc   :  { %1962 = vsyncpa [#allocation3], 1 }

</bundles_post_ra>
